<compile_context>
chip_gen: v5e
topology: v5e:2x2
jax: 0.10.0
libtpu: 0.0.40
codegen_flags: <defaults>
</compile_context>

<pallas_src>
import functools

import jax
import jax.numpy as jnp
from jax.experimental import pallas as pl
from jax.experimental.pallas import tpu as pltpu


def _conv_bn_relu_kernel(x_ref, w_ref, b_ref, o_ref, *, K, Wrow, M_t):
    # x_ref: (1, 1, L, Cin)     row-major flattened halo tile (compute dtype)
    # w_ref: (K*K, Cin, Cpad)   per-tap, BN-scale-folded, lane-padded weights
    # b_ref: (1, Cpad)          folded BN bias (f32)
    # o_ref: (1, 1, M_t, Cpad)  lane-dense output tile (M_t = TH * Wrow)
    acc = jnp.zeros((M_t, o_ref.shape[-1]), jnp.float32)
    for ky in range(K):                       # static K*K tap loop -> K*K MXU matmuls
        for kx in range(K):
            d = ky * Wrow + kx                # static sublane offset for this tap
            a = x_ref[0, 0, d:d + M_t, :]     # (M_t, Cin): pure offset slice, no reshape
            acc = acc + jnp.dot(a, w_ref[ky * K + kx],
                                preferred_element_type=jnp.float32)
    y = jnp.maximum(acc + b_ref[...], 0.0)    # +bias, ReLU (f32 epilogue, v5e-safe)
    o_ref[0, 0] = y.astype(o_ref.dtype)


def _pick_row_tile(H, Wrow, max_tile_rows):
    th = 1
    for cand in range(1, H + 1):
        if H % cand == 0 and cand * Wrow <= max_tile_rows:
            th = cand
    return th


def convolution_forward(x_nchw, w_oihw, gamma, beta, run_mean, run_var,
                        eps=1e-5, compute_dtype=jnp.bfloat16, max_tile_rows=512):
    """Conv2d(K, stride=1, padding=(K-1)//2, bias=False) + BatchNorm2d(eval) + ReLU.
       NCHW in / NCHW out."""
    N, Cin, H, W = x_nchw.shape
    Cout, _, K, _ = w_oihw.shape
    p = (K - 1) // 2
    Wrow = W + 2 * p
    Cpad = ((Cout + 127) // 128) * 128

    TH = _pick_row_tile(H, Wrow, max_tile_rows)   # rows of output per grid step
    n_t = H // TH
    M_t = TH * Wrow                               # matmul rows per tile (incl. wrap cols)
    L = (TH + 2 * p) * Wrow + 2 * p               # halo tile length (+tail for last tap)

    # ------------- wrapper-side layout plumbing (plain JAX, no 9x expansion) -------------
    x_nhwc = jnp.transpose(x_nchw, (0, 2, 3, 1)).astype(compute_dtype)
    x_pad = jnp.pad(x_nhwc, ((0, 0), (p, p), (p, p), (0, 0)))
    # Overlapping H tiles, each carrying its own 2p-row halo, flattened row-major.
    tiles = jnp.stack([x_pad[:, t * TH:t * TH + TH + 2 * p] for t in range(n_t)], axis=1)
    x_tiles = tiles.reshape(N, n_t, (TH + 2 * p) * Wrow, Cin)
    x_tiles = jnp.pad(x_tiles, ((0, 0), (0, 0), (0, L - (TH + 2 * p) * Wrow), (0, 0)))

    # Weights: OIHW -> (K*K, Cin, Cout), fold BN scale, pad Cout -> Cpad lanes.
    scale = gamma / jnp.sqrt(run_var + eps)
    bias = beta - run_mean * scale
    w_taps = jnp.transpose(w_oihw, (2, 3, 1, 0)).reshape(K * K, Cin, Cout)
    w_taps = w_taps * scale[None, None, :]
    w_taps = jnp.pad(w_taps, ((0, 0), (0, 0), (0, Cpad - Cout))).astype(compute_dtype)
    bias_pad = jnp.pad(bias.astype(jnp.float32), (0, Cpad - Cout)).reshape(1, Cpad)

    out_dtype = x_nchw.dtype
    itm_c = jnp.dtype(compute_dtype).itemsize
    itm_o = jnp.dtype(out_dtype).itemsize

    flops = 2 * N * H * W * K * K * Cin * Cout
    bytes_accessed = (N * n_t * L * Cin * itm_c
                      + K * K * Cin * Cpad * itm_c + Cpad * 4
                      + N * n_t * M_t * Cpad * itm_o)
    cost = pl.CostEstimate(flops=flops, transcendentals=0,
                           bytes_accessed=bytes_accessed)

    # 2x double-buffered in/out blocks + weights + accumulator headroom, v7x-safe cap.
    vmem_est = (2 * (L * Cin * itm_c + M_t * Cpad * itm_o)
                + K * K * Cin * Cpad * itm_c + Cpad * 4
                + 4 * M_t * Cpad * 4 + (2 << 20))
    vmem_limit = int(min(48 * 2 ** 20, max(8 * 2 ** 20, vmem_est)))

    kernel = functools.partial(_conv_bn_relu_kernel, K=K, Wrow=Wrow, M_t=M_t)

    out = pl.pallas_call(
        kernel,
        out_shape=jax.ShapeDtypeStruct((N, n_t, M_t, Cpad), out_dtype),
        grid_spec=pltpu.PrefetchScalarGridSpec(
            num_scalar_prefetch=0,
            grid=(N, n_t),
            in_specs=[
                pl.BlockSpec((1, 1, L, Cin), lambda n, t: (n, t, 0, 0)),
                pl.BlockSpec((K * K, Cin, Cpad), lambda n, t: (0, 0, 0)),
                pl.BlockSpec((1, Cpad), lambda n, t: (0, 0)),
            ],
            out_specs=pl.BlockSpec((1, 1, M_t, Cpad), lambda n, t: (n, t, 0, 0)),
        ),
        compiler_params=pltpu.CompilerParams(
            dimension_semantics=("parallel", "parallel"),
            vmem_limit_bytes=vmem_limit),
        cost_estimate=cost,
    )(x_tiles, w_taps, bias_pad)

    # Drop the 2p throwaway "wrap" columns and the lane padding, back to NCHW.
    out = out.reshape(N, n_t, TH, Wrow, Cpad)[:, :, :, :W, :Cout]
    out = out.reshape(N, H, W, Cout)
    return jnp.transpose(out, (0, 3, 1, 2))


def _reference(x_nchw, w_oihw, gamma, beta, run_mean, run_var, eps=1e-5):
    y = jax.lax.conv_general_dilated(
        x_nchw, w_oihw, window_strides=(1, 1), padding="SAME",
        dimension_numbers=("NCHW", "OIHW", "NCHW"))
    scale = gamma / jnp.sqrt(run_var + eps)
    bias = beta - run_mean * scale
    y = y * scale[None, :, None, None] + bias[None, :, None, None]
    return jnp.maximum(y, 0.0)


if __name__ == "__main__":
    # Small shapes consistent with the module: N=2, C_in=4, H=W=16, C_out=8, K=3.
    key = jax.random.PRNGKey(0)
    k_x, k_w, k_g, k_b, k_m, k_v = jax.random.split(key, 6)

    N, Cin, H, W = 2, 4, 16, 16
    Cout, K = 8, 3

    x = jax.random.normal(k_x, (N, Cin, H, W), dtype=jnp.float32)
    # Conv2d weights (bias=False because with_bn=True), deterministic init.
    w = jax.random.normal(k_w, (Cout, Cin, K, K), dtype=jnp.float32) * 0.1
    # BatchNorm2d parameters / running stats, deterministic init.
    gamma = 1.0 + 0.1 * jax.random.normal(k_g, (Cout,), dtype=jnp.float32)
    beta = 0.1 * jax.random.normal(k_b, (Cout,), dtype=jnp.float32)
    run_mean = 0.05 * jax.random.normal(k_m, (Cout,), dtype=jnp.float32)
    run_var = jnp.abs(1.0 + 0.1 * jax.random.normal(k_v, (Cout,), dtype=jnp.float32))

    ref = jax.block_until_ready(_reference(x, w, gamma, beta, run_mean, run_var))

    # f32 MXU operands, 2 row-tiles per image (exercises the halo path): strict check.
    out_f32 = jax.block_until_ready(
        convolution_forward(x, w, gamma, beta, run_mean, run_var,
                            compute_dtype=jnp.float32, max_tile_rows=160))
    assert out_f32.shape == (N, Cout, H, W)
    assert jnp.allclose(out_f32, ref, atol=1e-4, rtol=1e-4), "f32 mismatch vs reference"

    # Default path: bf16 MXU operands (recommended on v6e/v7x), f32 accumulation/epilogue.
    out_bf16 = jax.block_until_ready(
        convolution_forward(x, w, gamma, beta, run_mean, run_var))
    assert out_bf16.shape == (N, Cout, H, W)
    assert jnp.allclose(out_bf16, ref, atol=8e-2, rtol=8e-2), "bf16 mismatch vs reference"

    print("KERNEL_OK")
</pallas_src>

<mosaic_0001>
module attributes {stable_mosaic.version = 11 : i64} {
  func.func @_conv_bn_relu_kernel(%arg0: i32, %arg1: i32, %arg2: memref<1x1x182x4xf32, #tpu.memory_space<vmem>>, %arg3: memref<9x4x128xf32, #tpu.memory_space<vmem>>, %arg4: memref<1x128xf32, #tpu.memory_space<vmem>>, %arg5: memref<1x1x144x128xf32, #tpu.memory_space<vmem>>) attributes {dimension_semantics = [#tpu.dimension_semantics<parallel>, #tpu.dimension_semantics<parallel>], iteration_bounds = array<i64: 2, 2>, scalar_prefetch = 0 : i64, scratch_operands = 0 : i64, tpu.core_type = #tpu.core_type<tc>, window_params = [{transform_indices = @transform_0, window_bounds = array<i64: 1, 1, 182, 4>}, {pipeline_mode = #tpu.pipeline_mode<synchronous>, transform_indices = @transform_1, window_bounds = array<i64: 9, 4, 128>}, {pipeline_mode = #tpu.pipeline_mode<synchronous>, transform_indices = @transform_2, window_bounds = array<i64: 1, 128>}, {transform_indices = @transform_3, window_bounds = array<i64: 1, 1, 144, 128>}]} {
    %cst = arith.constant 0.000000e+00 : f32
    %0 = vector.broadcast %cst : f32 to vector<144x128xf32>
    %c0 = arith.constant 0 : index
    %c0_0 = arith.constant 0 : index
    %c0_1 = arith.constant 0 : index
    %c0_2 = arith.constant 0 : index
    %1 = vector.load %arg2[%c0, %c0_0, %c0_1, %c0_2] : memref<1x1x182x4xf32, #tpu.memory_space<vmem>>, vector<1x1x144x4xf32>
    %2 = vector.shape_cast %1 : vector<1x1x144x4xf32> to vector<144x4xf32>
    %c0_3 = arith.constant 0 : index
    %c0_4 = arith.constant 0 : index
    %c0_5 = arith.constant 0 : index
    %3 = vector.load %arg3[%c0_3, %c0_4, %c0_5] : memref<9x4x128xf32, #tpu.memory_space<vmem>>, vector<1x4x128xf32>
    %4 = vector.shape_cast %3 : vector<1x4x128xf32> to vector<4x128xf32>
    %cst_6 = arith.constant dense<0.000000e+00> : vector<144x128xf32>
    %5 = tpu.matmul %2, %4, %cst_6 {dimension_numbers = #tpu.dot_dimension_numbers<[1], [0], [0], [1], [0, 0, 1, 1], [], []>} : vector<144x4xf32>, vector<4x128xf32>, vector<144x128xf32> -> vector<144x128xf32>
    %6 = arith.addf %0, %5 : vector<144x128xf32>
    %c0_7 = arith.constant 0 : index
    %c0_8 = arith.constant 0 : index
    %c1 = arith.constant 1 : index
    %c0_9 = arith.constant 0 : index
    %7 = vector.load %arg2[%c0_7, %c0_8, %c1, %c0_9] : memref<1x1x182x4xf32, #tpu.memory_space<vmem>>, vector<1x1x144x4xf32>
    %8 = vector.shape_cast %7 : vector<1x1x144x4xf32> to vector<144x4xf32>
    %c1_10 = arith.constant 1 : index
    %c0_11 = arith.constant 0 : index
    %c0_12 = arith.constant 0 : index
    %9 = vector.load %arg3[%c1_10, %c0_11, %c0_12] : memref<9x4x128xf32, #tpu.memory_space<vmem>>, vector<1x4x128xf32>
    %10 = vector.shape_cast %9 : vector<1x4x128xf32> to vector<4x128xf32>
    %cst_13 = arith.constant dense<0.000000e+00> : vector<144x128xf32>
    %11 = tpu.matmul %8, %10, %cst_13 {dimension_numbers = #tpu.dot_dimension_numbers<[1], [0], [0], [1], [0, 0, 1, 1], [], []>} : vector<144x4xf32>, vector<4x128xf32>, vector<144x128xf32> -> vector<144x128xf32>
    %12 = arith.addf %6, %11 : vector<144x128xf32>
    %c0_14 = arith.constant 0 : index
    %c0_15 = arith.constant 0 : index
    %c2 = arith.constant 2 : index
    %c0_16 = arith.constant 0 : index
    %13 = vector.load %arg2[%c0_14, %c0_15, %c2, %c0_16] : memref<1x1x182x4xf32, #tpu.memory_space<vmem>>, vector<1x1x144x4xf32>
    %14 = vector.shape_cast %13 : vector<1x1x144x4xf32> to vector<144x4xf32>
    %c2_17 = arith.constant 2 : index
    %c0_18 = arith.constant 0 : index
    %c0_19 = arith.constant 0 : index
    %15 = vector.load %arg3[%c2_17, %c0_18, %c0_19] : memref<9x4x128xf32, #tpu.memory_space<vmem>>, vector<1x4x128xf32>
    %16 = vector.shape_cast %15 : vector<1x4x128xf32> to vector<4x128xf32>
    %cst_20 = arith.constant dense<0.000000e+00> : vector<144x128xf32>
    %17 = tpu.matmul %14, %16, %cst_20 {dimension_numbers = #tpu.dot_dimension_numbers<[1], [0], [0], [1], [0, 0, 1, 1], [], []>} : vector<144x4xf32>, vector<4x128xf32>, vector<144x128xf32> -> vector<144x128xf32>
    %18 = arith.addf %12, %17 : vector<144x128xf32>
    %c0_21 = arith.constant 0 : index
    %c0_22 = arith.constant 0 : index
    %c18 = arith.constant 18 : index
    %c0_23 = arith.constant 0 : index
    %19 = vector.load %arg2[%c0_21, %c0_22, %c18, %c0_23] : memref<1x1x182x4xf32, #tpu.memory_space<vmem>>, vector<1x1x144x4xf32>
    %20 = vector.shape_cast %19 : vector<1x1x144x4xf32> to vector<144x4xf32>
    %c3 = arith.constant 3 : index
    %c0_24 = arith.constant 0 : index
    %c0_25 = arith.constant 0 : index
    %21 = vector.load %arg3[%c3, %c0_24, %c0_25] : memref<9x4x128xf32, #tpu.memory_space<vmem>>, vector<1x4x128xf32>
    %22 = vector.shape_cast %21 : vector<1x4x128xf32> to vector<4x128xf32>
    %cst_26 = arith.constant dense<0.000000e+00> : vector<144x128xf32>
    %23 = tpu.matmul %20, %22, %cst_26 {dimension_numbers = #tpu.dot_dimension_numbers<[1], [0], [0], [1], [0, 0, 1, 1], [], []>} : vector<144x4xf32>, vector<4x128xf32>, vector<144x128xf32> -> vector<144x128xf32>
    %24 = arith.addf %18, %23 : vector<144x128xf32>
    %c0_27 = arith.constant 0 : index
    %c0_28 = arith.constant 0 : index
    %c19 = arith.constant 19 : index
    %c0_29 = arith.constant 0 : index
    %25 = vector.load %arg2[%c0_27, %c0_28, %c19, %c0_29] : memref<1x1x182x4xf32, #tpu.memory_space<vmem>>, vector<1x1x144x4xf32>
    %26 = vector.shape_cast %25 : vector<1x1x144x4xf32> to vector<144x4xf32>
    %c4 = arith.constant 4 : index
    %c0_30 = arith.constant 0 : index
    %c0_31 = arith.constant 0 : index
    %27 = vector.load %arg3[%c4, %c0_30, %c0_31] : memref<9x4x128xf32, #tpu.memory_space<vmem>>, vector<1x4x128xf32>
    %28 = vector.shape_cast %27 : vector<1x4x128xf32> to vector<4x128xf32>
    %cst_32 = arith.constant dense<0.000000e+00> : vector<144x128xf32>
    %29 = tpu.matmul %26, %28, %cst_32 {dimension_numbers = #tpu.dot_dimension_numbers<[1], [0], [0], [1], [0, 0, 1, 1], [], []>} : vector<144x4xf32>, vector<4x128xf32>, vector<144x128xf32> -> vector<144x128xf32>
    %30 = arith.addf %24, %29 : vector<144x128xf32>
    %c0_33 = arith.constant 0 : index
    %c0_34 = arith.constant 0 : index
    %c20 = arith.constant 20 : index
    %c0_35 = arith.constant 0 : index
    %31 = vector.load %arg2[%c0_33, %c0_34, %c20, %c0_35] : memref<1x1x182x4xf32, #tpu.memory_space<vmem>>, vector<1x1x144x4xf32>
    %32 = vector.shape_cast %31 : vector<1x1x144x4xf32> to vector<144x4xf32>
    %c5 = arith.constant 5 : index
    %c0_36 = arith.constant 0 : index
    %c0_37 = arith.constant 0 : index
    %33 = vector.load %arg3[%c5, %c0_36, %c0_37] : memref<9x4x128xf32, #tpu.memory_space<vmem>>, vector<1x4x128xf32>
    %34 = vector.shape_cast %33 : vector<1x4x128xf32> to vector<4x128xf32>
    %cst_38 = arith.constant dense<0.000000e+00> : vector<144x128xf32>
    %35 = tpu.matmul %32, %34, %cst_38 {dimension_numbers = #tpu.dot_dimension_numbers<[1], [0], [0], [1], [0, 0, 1, 1], [], []>} : vector<144x4xf32>, vector<4x128xf32>, vector<144x128xf32> -> vector<144x128xf32>
    %36 = arith.addf %30, %35 : vector<144x128xf32>
    %c0_39 = arith.constant 0 : index
    %c0_40 = arith.constant 0 : index
    %c36 = arith.constant 36 : index
    %c0_41 = arith.constant 0 : index
    %37 = vector.load %arg2[%c0_39, %c0_40, %c36, %c0_41] : memref<1x1x182x4xf32, #tpu.memory_space<vmem>>, vector<1x1x144x4xf32>
    %38 = vector.shape_cast %37 : vector<1x1x144x4xf32> to vector<144x4xf32>
    %c6 = arith.constant 6 : index
    %c0_42 = arith.constant 0 : index
    %c0_43 = arith.constant 0 : index
    %39 = vector.load %arg3[%c6, %c0_42, %c0_43] : memref<9x4x128xf32, #tpu.memory_space<vmem>>, vector<1x4x128xf32>
    %40 = vector.shape_cast %39 : vector<1x4x128xf32> to vector<4x128xf32>
    %cst_44 = arith.constant dense<0.000000e+00> : vector<144x128xf32>
    %41 = tpu.matmul %38, %40, %cst_44 {dimension_numbers = #tpu.dot_dimension_numbers<[1], [0], [0], [1], [0, 0, 1, 1], [], []>} : vector<144x4xf32>, vector<4x128xf32>, vector<144x128xf32> -> vector<144x128xf32>
    %42 = arith.addf %36, %41 : vector<144x128xf32>
    %c0_45 = arith.constant 0 : index
    %c0_46 = arith.constant 0 : index
    %c37 = arith.constant 37 : index
    %c0_47 = arith.constant 0 : index
    %43 = vector.load %arg2[%c0_45, %c0_46, %c37, %c0_47] : memref<1x1x182x4xf32, #tpu.memory_space<vmem>>, vector<1x1x144x4xf32>
    %44 = vector.shape_cast %43 : vector<1x1x144x4xf32> to vector<144x4xf32>
    %c7 = arith.constant 7 : index
    %c0_48 = arith.constant 0 : index
    %c0_49 = arith.constant 0 : index
    %45 = vector.load %arg3[%c7, %c0_48, %c0_49] : memref<9x4x128xf32, #tpu.memory_space<vmem>>, vector<1x4x128xf32>
    %46 = vector.shape_cast %45 : vector<1x4x128xf32> to vector<4x128xf32>
    %cst_50 = arith.constant dense<0.000000e+00> : vector<144x128xf32>
    %47 = tpu.matmul %44, %46, %cst_50 {dimension_numbers = #tpu.dot_dimension_numbers<[1], [0], [0], [1], [0, 0, 1, 1], [], []>} : vector<144x4xf32>, vector<4x128xf32>, vector<144x128xf32> -> vector<144x128xf32>
    %48 = arith.addf %42, %47 : vector<144x128xf32>
    %c0_51 = arith.constant 0 : index
    %c0_52 = arith.constant 0 : index
    %c38 = arith.constant 38 : index
    %c0_53 = arith.constant 0 : index
    %49 = vector.load %arg2[%c0_51, %c0_52, %c38, %c0_53] : memref<1x1x182x4xf32, #tpu.memory_space<vmem>>, vector<1x1x144x4xf32>
    %50 = vector.shape_cast %49 : vector<1x1x144x4xf32> to vector<144x4xf32>
    %c8 = arith.constant 8 : index
    %c0_54 = arith.constant 0 : index
    %c0_55 = arith.constant 0 : index
    %51 = vector.load %arg3[%c8, %c0_54, %c0_55] : memref<9x4x128xf32, #tpu.memory_space<vmem>>, vector<1x4x128xf32>
    %52 = vector.shape_cast %51 : vector<1x4x128xf32> to vector<4x128xf32>
    %cst_56 = arith.constant dense<0.000000e+00> : vector<144x128xf32>
    %53 = tpu.matmul %50, %52, %cst_56 {dimension_numbers = #tpu.dot_dimension_numbers<[1], [0], [0], [1], [0, 0, 1, 1], [], []>} : vector<144x4xf32>, vector<4x128xf32>, vector<144x128xf32> -> vector<144x128xf32>
    %54 = arith.addf %48, %53 : vector<144x128xf32>
    %c0_57 = arith.constant 0 : index
    %c0_58 = arith.constant 0 : index
    %55 = vector.load %arg4[%c0_57, %c0_58] : memref<1x128xf32, #tpu.memory_space<vmem>>, vector<1x128xf32>
    %56 = vector.broadcast %55 : vector<1x128xf32> to vector<144x128xf32>
    %57 = arith.addf %54, %56 : vector<144x128xf32>
    %cst_59 = arith.constant 0.000000e+00 : f32
    %58 = vector.broadcast %cst_59 : f32 to vector<144x128xf32>
    %59 = arith.maximumf %57, %58 : vector<144x128xf32>
    %c0_60 = arith.constant 0 : index
    %c0_61 = arith.constant 0 : index
    %c0_62 = arith.constant 0 : index
    %c0_63 = arith.constant 0 : index
    %60 = vector.load %arg5[%c0_60, %c0_61, %c0_62, %c0_63] : memref<1x1x144x128xf32, #tpu.memory_space<vmem>>, vector<1x1x144x128xf32>
    %61 = vector.shape_cast %60 : vector<1x1x144x128xf32> to vector<144x128xf32>
    %62 = vector.shape_cast %59 : vector<144x128xf32> to vector<1x1x144x128xf32>
    tpu.vector_store %arg5[%c0_60, %c0_61, %c0_62, %c0_63], %62 {strides = array<i32>} : memref<1x1x144x128xf32, #tpu.memory_space<vmem>>, vector<1x1x144x128xf32>,
    return
  }
  func.func @transform_0(%arg0: i32, %arg1: i32) -> (i32, i32, i32, i32) {
    %c0_i32 = arith.constant 0 : i32
    %c0_i32_0 = arith.constant 0 : i32
    %c0_i32_1 = arith.constant 0 : i32
    return %arg0, %arg1, %c0_i32, %c0_i32_0 : i32, i32, i32, i32
  }
  func.func @transform_1(%arg0: i32, %arg1: i32) -> (i32, i32, i32) {
    %c0_i32 = arith.constant 0 : i32
    %c0_i32_0 = arith.constant 0 : i32
    %c0_i32_1 = arith.constant 0 : i32
    %c0_i32_2 = arith.constant 0 : i32
    return %c0_i32, %c0_i32_0, %c0_i32_1 : i32, i32, i32
  }
  func.func @transform_2(%arg0: i32, %arg1: i32) -> (i32, i32) {
    %c0_i32 = arith.constant 0 : i32
    %c0_i32_0 = arith.constant 0 : i32
    %c0_i32_1 = arith.constant 0 : i32
    return %c0_i32, %c0_i32_0 : i32, i32
  }
  func.func @transform_3(%arg0: i32, %arg1: i32) -> (i32, i32, i32, i32) {
    %c0_i32 = arith.constant 0 : i32
    %c0_i32_0 = arith.constant 0 : i32
    %c0_i32_1 = arith.constant 0 : i32
    return %arg0, %arg1, %c0_i32, %c0_i32_0 : i32, i32, i32, i32
  }
}

</mosaic_0001>

<bundles_post_ra>
// kernel: tpu_custom_call.1
= control target key start
LH: loop header
LB: loop body
LE: loop exit
PB: predicated region body
PF: predicated region fallthrough
CT: control target
= control target key end

     0   :  { %8 = vsyncpa [#allocation3], 0  ;;  %s2813_s0 = inlined_call_operand.vmem [shape: f32[2,2,182,4], index: 0, kind: input, shape index: {}]   ;;  %s2814_s1 = inlined_call_operand.vmem [shape: f32[9,4,128], index: 1, kind: input, shape index: {}]   ;;  %s2815_s2 = inlined_call_operand.vmem [shape: f32[1,128], index: 2, kind: input, shape index: {}]   ;;  %s2816_s3 = inlined_call_operand.hbm [shape: f32[2,2,144,128], index: 3, kind: output, shape index: {}]  }
   0x1   :  { %10 = vsyncpa [#allocation3 + $0x1], 0  ;;  %s2205_s12 = smov 0   ;;  %s2207_s13 = smov 0  }
   0x2   :  { %s2209_s14 = smov 0   ;;  %s2211_s15 = smov 0  }
   0x3   :  { %s2213_s16 = smov 0   ;;  %s2215_s17 = smov 0  }
   0x4   :  { %s2217_s18 = smov 0   ;;  %s2219_s19 = smov 0  }
   0x5 LB: > { %s1817_s20 = sadd.s32 4294967295, %s2181_s19   ;;  %s1818_s21 = sadd.s32 4294967294, %s2181_s19   ;;  %s2181_s19 = sphi %s2219_s19, %s16_s19   ;;  %s2177_s18 = sphi %s2217_s18, %s2825_s18   ;;  %s2173_s17 = sphi %s2215_s17, %s2824_s17   ;;  %s2169_s16 = sphi %s2213_s16, %s2823_s16   ;;  %s2165_s15 = sphi %s2211_s15, %s2822_s15   ;;  %s2161_s14 = sphi %s2209_s14, %s2821_s14   ;;  %s2157_s13 = sphi %s2207_s13, %s2820_s13   ;;  %s2153_s12 = sphi %s2205_s12, %s2819_s12  }
   0x6   : > { %s25_s22 = sadd.s32 1, %s2173_s17  ;;  %s28_s23 = sadd.s32 1, %s2177_s18 }
   0x7   : > { %p26_p0 = scmp.ge.s32.totalorder %s25_s22, 2  ;;  %p117_p1 = scmp.ne.s32.totalorder %s2161_s14, %s2157_s13 }
   0x8   : > { %p118_p2 = scmp.eq.s32.totalorder %s1817_s20, 3  ;;  %p123_p5 = scmp.ne.s32.totalorder %s2157_s13, %s2153_s12 }
   0x9   : > { %s2827_s22 = smov (%p26_p0, %s25_s22), 0  ;;  %s2829_s23 = smov (!%p26_p0, %s28_s23), %s2177_s18 }
   0xa   : > { %s103_s24 = ssub.s32 %s2173_s17, %s2827_s22  ;;  %p2256_p3 = por %p118_p2, %p117_p1 }
   0xb   : > { %p30_p4 = scmp.ge.s32.totalorder %s2829_s23, 2  ;;  %p124_p6 = scmp.eq.s32.totalorder %s1818_s21, 3 }
   0xc   : > { %p1821_p7 = scmp.ge.s32.totalorder %s2181_s19, 1  ;;  %p160_p9 = scmp.lt.s32.totalorder %s2181_s19, 5 }
   0xd   : > { %s2831_s23 = smov (%p30_p4, %s2829_s23), 0  ;;  %p2265_p8 = por %p124_p6, %p123_p5 }
   0xe   : > { %s102_s27 = ssub.s32 %s2177_s18, %s2831_s23  ;;  %s107_s28 = sadd.s32 1, %s2161_s14 }
   0xf   : > { %s104_s29 = sor.u32 %s103_s24, %s102_s27  ;;  %p161_p10 = pnand %p1821_p7, %p160_p9 }
  0x10   : > { %p105_p11 = scmp.eq.s32.totalorder %s104_s29, 0  ;;  %p188_p12 = scmp.lt.s32.totalorder (!%p161_p10), %s2169_s16, 1 }
  0x11   : > { %164 = sbr.rel (%p161_p10) target bundleno = 498 (0x1f2), region = 32  ;;  %p190_p13 = scmp.lt.s32.totalorder (!%p161_p10), %s2165_s15, 1 }
  0x12   : > { %s2274_s30 = scalar_select %p105_p11, %s2161_s14, %s107_s28  }
  0x13   : > { %s2012_s9 = smul.u32 (!%p161_p10), 36, %s2169_s16 }
  0x16   : > { %v1823_v0 = vld [vmem:[%s2814_s1 + $0x4] sm:$0xf]  ;;  %vm291_vm0 = vcmask 1043456   ;;  %v1862_v1 = vld [vmem:[%s2814_s1 + $0x8] sm:$0xf]  ;;  %s189_s20 = scalar_select %p188_p12, %s2169_s16, 1 }
  0x17   : > { %2005 = vmatpush.msk.msra.mxu1 %vm291_vm0, %v1823_v0  ;;  %2006 = vmatpush.msk.msra.mxu2 %vm291_vm0, %v1823_v0  ;;  %v215_v2 = vld [vmem:[%s2814_s1] sm:$0xf]  ;;  %v1902_v3 = vld [vmem:[%s2814_s1 + $0x10] sm:$0xf]  ;;  %v1882_v4 = vld [vmem:[%s2814_s1 + $0xc] sm:$0xf] }
  0x18   : > { %s191_s27 = scalar_select %p190_p13, %s2165_s15, 1  ;;  %1824 = vmatpush.msk.msra.mxu0 %vm291_vm0, %v1823_v0  ;;  %2007 = vmatpush.msk.msra.mxu3 %vm291_vm0, %v1823_v0  ;;  %vm236_vm1 = vcmask 31744   ;;  %v1942_v13 = vld [vmem:[%s2814_s1 + $0x18] sm:$0xf]  ;;  %v1962_v14 = vld [vmem:[%s2814_s1 + $0x1c] sm:$0xf] }
  0x19   : > { %1863 = vmatpush.msk.msrb.mxu2 %vm291_vm0, %v1862_v1  ;;  %1843 = vmatpush.msk.msrb.mxu1 %vm291_vm0, %v215_v2  ;;  %s2010_s28 = smul.u32 46, %s189_s20  ;;  %v1922_v15 = vld [vmem:[%s2814_s1 + $0x14] sm:$0xf]  ;;  %v1982_v20 = vld [vmem:[%s2814_s1 + $0x20] sm:$0xf] }
  0x1a   : > { %1903 = vmatpush.msk.msrb.mxu0 %vm291_vm0, %v1902_v3  ;;  %1883 = vmatpush.msk.msrb.mxu3 %vm291_vm0, %v1882_v4  ;;  %s2009_s29 = smul.u32 23, %s191_s27 }
  0x1c   : > { %s194_s4 = sadd.s32 %s2010_s28, %s2009_s29  ;;  %s185_s29 = sand.u32 1, %s2157_s13  }
  0x1d   : > { %s1822_s5 = sshll.u32 %s194_s4, 3  ;;  %s2008_s6 = smul.u32 144, %s185_s29 }
  0x1e   : > { %s2306_s8 = scalar_lea.vmem %s2813_s0, %s1822_s5  ;;  %s1715_s27 = scalar_lea.sflag [#allocation3], %s185_s29 }
  0x1f   : > { %v221_v5 = vld [vmem:[%s2306_s8 + $0x29] sm:$0xff]  ;;  %v226_v6 = vld [vmem:[%s2306_s8 + $0x51] sm:$0xff]  ;;  %v216_v7 = vld [vmem:[%s2306_s8 + $0x1] sm:$0xff]  ;;  %s2714_s7 = scalar_lea.vmem [#allocation2], %s2008_s6 }
  0x20   : > { %1830 = vmatmul.msk.f32.vlgmr.msra.gmra.mxu1 %vm236_vm1, %v221_v5  ;;  %1835 = vmatmul.msk.f32.vlgmr.msra.gmra.mxu2 %vm236_vm1, %v226_v6  ;;  %v231_v8 = vld [vmem:[%s2306_s8 + $0x79] sm:$0xff]  ;;  %v222_v9 = vld [vmem:[%s2306_s8 + $0x31] sm:$0xff]  ;;  %v217_v11 = vld [vmem:[%s2306_s8 + $0x9] sm:$0xff]  ;;  %s1729_s21 = sshll.u32 %s2714_s7, 4  ;;  %s1730_s21 = int_to_ptr.vmem [resolvable:$true] %s1729_s21 }
  0x21   : > { %1825 = vmatmul.msk.f32.vlgmr.msra.gmra.mxu0 %vm236_vm1, %v216_v7  ;;  %1840 = vmatmul.msk.f32.vlgmr.msra.gmra.mxu3 %vm236_vm1, %v231_v8  ;;  %v227_v10 = vld [vmem:[%s2306_s8 + $0x59] sm:$0xff]  ;;  %v232_v12 = vld [vmem:[%s2306_s8 + $0x81] sm:$0xff]  ;;  %v218_v18 = vld [vmem:[%s2306_s8 + $0x11] sm:$0xff] }
  0x22   : > { %1943 = vmatpush.msk.msra.mxu2 %vm291_vm0, %v1942_v13  ;;  %1923 = vmatpush.msk.msra.mxu1 %vm291_vm0, %v1922_v15  ;;  %v223_v16 = vld [vmem:[%s2306_s8 + $0x39] sm:$0xff]  ;;  %v228_v17 = vld [vmem:[%s2306_s8 + $0x61] sm:$0xff]  ;;  %v233_v19 = vld [vmem:[%s2306_s8 + $0x89] sm:$0xff] }
  0x23   : > { %1963 = vmatpush.msk.msra.mxu3 %vm291_vm0, %v1962_v14  ;;  %1983 = vmatpush.msk.msra.mxu0 %vm291_vm0, %v1982_v20  ;;  %v224_v21 = vld [vmem:[%s2306_s8 + $0x41] sm:$0xff]  ;;  %v229_v22 = vld [vmem:[%s2306_s8 + $0x69] sm:$0xff]  ;;  %v219_v23 = vld [vmem:[%s2306_s8 + $0x19] sm:$0xff] }
  0x24   : > { %v660_v24 = vld [vmem:[%s2306_s8 + $0x12] sm:$0xff]  ;;  %v225_v25 = vld [vmem:[%s2306_s8 + $0x49] sm:$0xff]  ;;  %v220_v27 = vld [vmem:[%s2306_s8 + $0x21] sm:$0xff] }
  0x25   : > { %v230_v26 = vld [vmem:[%s2306_s8 + $0x71] sm:$0xff]  ;;  %v661_v28 = vld [vmem:[%s2306_s8 + $0x1a] sm:$0xff]  ;;  %v494_v30 = vld [vmem:[%s2306_s8 + $0x2] sm:$0xff] }
  0x26   : > { %v197_v29 = vld [vmem:[%s2306_s8] sm:$0xff]  ;;  %v826_v31 = vld [vmem:[%s2306_s8 + $0x13] sm:$0xff]  ;;  %v198_v33 = vld [vmem:[%s2306_s8 + $0x8] sm:$0xff] }
  0x27   : > { %v662_v32 = vld [vmem:[%s2306_s8 + $0x22] sm:$0xff]  ;;  %v495_v34 = vld [vmem:[%s2306_s8 + $0xa] sm:$0xff]  ;;  %v664_v39 = vld [vmem:[%s2306_s8 + $0x32] sm:$0xff] }
  0x28   : > { %1831 = vmatmul.msk.f32.gmra.mxu1 %vm236_vm1, %v222_v9  ;;  %1836 = vmatmul.msk.f32.gmra.mxu2 %vm236_vm1, %v227_v10  ;;  %v827_v35 = vld [vmem:[%s2306_s8 + $0x1b] sm:$0xff]  ;;  %v663_v36 = vld [vmem:[%s2306_s8 + $0x2a] sm:$0xff]  ;;  %v830_v44 = vld [vmem:[%s2306_s8 + $0x33] sm:$0xff] }
  0x29   : > { %1826 = vmatmul.msk.f32.gmra.mxu0 %vm236_vm1, %v217_v11  ;;  %1841 = vmatmul.msk.f32.gmra.mxu3 %vm236_vm1, %v232_v12  ;;  %v199_v37 = vld [vmem:[%s2306_s8 + $0x10] sm:$0xff]  ;;  %v828_v38 = vld [vmem:[%s2306_s8 + $0x23] sm:$0xff]  ;;  %v200_v40 = vld [vmem:[%s2306_s8 + $0x18] sm:$0xff] }
  0x2a   : > { %v829_v41 = vld [vmem:[%s2306_s8 + $0x2b] sm:$0xff]  ;;  %v665_v42 = vld [vmem:[%s2306_s8 + $0x3a] sm:$0xff]  ;;  %v666_v45 = vld [vmem:[%s2306_s8 + $0x42] sm:$0xff] }
  0x2b   : > { %v201_v43 = vld [vmem:[%s2306_s8 + $0x20] sm:$0xff]  ;;  %v202_v46 = vld [vmem:[%s2306_s8 + $0x28] sm:$0xff]  ;;  %v203_v49 = vld [vmem:[%s2306_s8 + $0x30] sm:$0xff] }
  0x2c   : > { %v831_v47 = vld [vmem:[%s2306_s8 + $0x3b] sm:$0xff]  ;;  %v667_v48 = vld [vmem:[%s2306_s8 + $0x4a] sm:$0xff]  ;;  %v668_v51 = vld [vmem:[%s2306_s8 + $0x52] sm:$0xff] }
  0x2d   : > { %v832_v50 = vld [vmem:[%s2306_s8 + $0x43] sm:$0xff]  ;;  %v204_v52 = vld [vmem:[%s2306_s8 + $0x38] sm:$0xff]  ;;  %v833_v53 = vld [vmem:[%s2306_s8 + $0x4b] sm:$0xff] }
  0x2e   : > { %v669_v54 = vld [vmem:[%s2306_s8 + $0x5a] sm:$0xff]  ;;  %v670_v57 = vld [vmem:[%s2306_s8 + $0x62] sm:$0xff]  ;;  %v671_v60 = vld [vmem:[%s2306_s8 + $0x6a] sm:$0xff] }
  0x2f   : > { %v205_v55 = vld [vmem:[%s2306_s8 + $0x40] sm:$0xff]  ;;  %v834_v56 = vld [vmem:[%s2306_s8 + $0x53] sm:$0xff]  ;;  %v206_v58 = vld [vmem:[%s2306_s8 + $0x48] sm:$0xff] }
  0x30   : > { %1832 = vmatmul.msk.f32.gmra.mxu1 %vm236_vm1, %v223_v16  ;;  %1837 = vmatmul.msk.f32.gmra.mxu2 %vm236_vm1, %v228_v17  ;;  %v835_v59 = vld [vmem:[%s2306_s8 + $0x5b] sm:$0xff]  ;;  %v207_v61 = vld [vmem:[%s2306_s8 + $0x50] sm:$0xff]  ;;  %v836_v62 = vld [vmem:[%s2306_s8 + $0x63] sm:$0xff] }
  0x31   : > { %1827 = vmatmul.msk.f32.gmra.mxu0 %vm236_vm1, %v218_v18  ;;  %1842 = vmatmul.msk.f32.gmra.mxu3 %vm236_vm1, %v233_v19  ;;  %v672_v63 = vld [vmem:[%s2306_s8 + $0x72] sm:$0xff]  ;;  %v673_v4 = vld [vmem:[%s2306_s8 + $0x7a] sm:$0xff]  ;;  %v674_v11 = vld [vmem:[%s2306_s8 + $0x82] sm:$0xff] }
  0x32   : > { %v208_v1 = vld [vmem:[%s2306_s8 + $0x58] sm:$0xff]  ;;  %v837_v3 = vld [vmem:[%s2306_s8 + $0x6b] sm:$0xff]  ;;  %v209_v7 = vld [vmem:[%s2306_s8 + $0x60] sm:$0xff] }
  0x33   : > { %v838_v10 = vld [vmem:[%s2306_s8 + $0x73] sm:$0xff]  ;;  %v210_v14 = vld [vmem:[%s2306_s8 + $0x68] sm:$0xff]  ;;  %v839_v17 = vld [vmem:[%s2306_s8 + $0x7b] sm:$0xff] }
  0x34   : > { %v675_v18 = vld [vmem:[%s2306_s8 + $0x8a] sm:$0xff] }
  0x38   : > { %1833 = vmatmul.msk.f32.gmra.mxu1 %vm236_vm1, %v224_v21  ;;  %1838 = vmatmul.msk.f32.gmra.mxu2 %vm236_vm1, %v229_v22  ;;  %v211_v21 = vld [vmem:[%s2306_s8 + $0x70] sm:$0xff] }
  0x39   : > { %1828 = vmatmul.msk.f32.gmra.mxu0 %vm236_vm1, %v219_v23  ;;  %1884 = vmatmul.msk.f32.vlgmr.msrb.gmra.mxu3 %vm236_vm1, %v660_v24 }
  0x40   : > { %1834 = vmatmul.msk.f32.gmra.mxu1 %vm236_vm1, %v225_v25  ;;  %1839 = vmatmul.msk.f32.gmra.mxu2 %vm236_vm1, %v230_v26  ;;  %v676_v25 = vld [vmem:[%s2306_s8 + $0x92] sm:$0xff] }
  0x41   : > { %1829 = vmatmul.msk.f32.gmra.mxu0 %vm236_vm1, %v220_v27  ;;  %1885 = vmatmul.msk.f32.gmra.mxu3 %vm236_vm1, %v661_v28 }
  0x48   : > { %1844 = vmatmul.msk.f32.vlgmr.msrb.gmra.mxu1 %vm236_vm1, %v197_v29  ;;  %1864 = vmatmul.msk.f32.vlgmr.msrb.gmra.mxu2 %vm236_vm1, %v494_v30 }
  0x49   : > { %1904 = vmatmul.msk.f32.vlgmr.msrb.gmra.mxu0 %vm236_vm1, %v826_v31  ;;  %1886 = vmatmul.msk.f32.gmra.mxu3 %vm236_vm1, %v662_v32  ;;  %v841_v31 = vld [vmem:[%s2306_s8 + $0x8b] sm:$0xff] }
  0x50   : > { %1845 = vmatmul.msk.f32.gmra.mxu1 %vm236_vm1, %v198_v33  ;;  %1865 = vmatmul.msk.f32.gmra.mxu2 %vm236_vm1, %v495_v34 }
  0x51   : > { %1905 = vmatmul.msk.f32.gmra.mxu0 %vm236_vm1, %v827_v35  ;;  %1887 = vmatmul.msk.f32.gmra.mxu3 %vm236_vm1, %v663_v36  ;;  %v213_v35 = vld [vmem:[%s2306_s8 + $0x80] sm:$0xff] }
  0x58   : > { %1846 = vmatmul.msk.f32.gmra.mxu1 %vm236_vm1, %v199_v37  ;;  %1866 = vmatmul.msk.f32.gmra.mxu2 %vm236_vm1, %v660_v24  ;;  %v840_v24 = vld [vmem:[%s2306_s8 + $0x83] sm:$0xff] }
  0x59   : > { %1906 = vmatmul.msk.f32.gmra.mxu0 %vm236_vm1, %v828_v38  ;;  %1888 = vmatmul.msk.f32.gmra.mxu3 %vm236_vm1, %v664_v39  ;;  %v842_v38 = vld [vmem:[%s2306_s8 + $0x93] sm:$0xff] }
  0x60   : > { %1847 = vmatmul.msk.f32.gmra.mxu1 %vm236_vm1, %v200_v40  ;;  %1867 = vmatmul.msk.f32.gmra.mxu2 %vm236_vm1, %v661_v28  ;;  %v212_v28 = vld [vmem:[%s2306_s8 + $0x78] sm:$0xff] }
  0x61   : > { %1907 = vmatmul.msk.f32.gmra.mxu0 %vm236_vm1, %v829_v41  ;;  %1889 = vmatmul.msk.f32.gmra.mxu3 %vm236_vm1, %v665_v42 }
  0x68   : > { %1848 = vmatmul.msk.f32.gmra.mxu1 %vm236_vm1, %v201_v43  ;;  %1868 = vmatmul.msk.f32.gmra.mxu2 %vm236_vm1, %v662_v32  ;;  %v677_v32 = vld [vmem:[%s2306_s8 + $0x9a] sm:$0xff] }
  0x69   : > { %1908 = vmatmul.msk.f32.gmra.mxu0 %vm236_vm1, %v830_v44  ;;  %1890 = vmatmul.msk.f32.gmra.mxu3 %vm236_vm1, %v666_v45  ;;  %v214_v44 = vld [vmem:[%s2306_s8 + $0x88] sm:$0xff] }
  0x70   : > { %1849 = vmatmul.msk.f32.gmra.mxu1 %vm236_vm1, %v202_v46  ;;  %1869 = vmatmul.msk.f32.gmra.mxu2 %vm236_vm1, %v663_v36 }
  0x71   : > { %1909 = vmatmul.msk.f32.gmra.mxu0 %vm236_vm1, %v831_v47  ;;  %1891 = vmatmul.msk.f32.gmra.mxu3 %vm236_vm1, %v667_v48 }
  0x78   : > { %1850 = vmatmul.msk.f32.gmra.mxu1 %vm236_vm1, %v203_v49  ;;  %1870 = vmatmul.msk.f32.gmra.mxu2 %vm236_vm1, %v664_v39  ;;  %v1324_v39 = vld [vmem:[%s2306_s8 + $0x25] sm:$0xff]  ;;  %v1325_v49 = vld [vmem:[%s2306_s8 + $0x2d] sm:$0xff] }
  0x79   : > { %1910 = vmatmul.msk.f32.gmra.mxu0 %vm236_vm1, %v832_v50  ;;  %1892 = vmatmul.msk.f32.gmra.mxu3 %vm236_vm1, %v668_v51 }
  0x80   : > { %1851 = vmatmul.msk.f32.gmra.mxu1 %vm236_vm1, %v204_v52  ;;  %1871 = vmatmul.msk.f32.gmra.mxu2 %vm236_vm1, %v665_v42 }
  0x81   : > { %1911 = vmatmul.msk.f32.gmra.mxu0 %vm236_vm1, %v833_v53  ;;  %1893 = vmatmul.msk.f32.gmra.mxu3 %vm236_vm1, %v669_v54 }
  0x88   : > { %1852 = vmatmul.msk.f32.gmra.mxu1 %vm236_vm1, %v205_v55  ;;  %1872 = vmatmul.msk.f32.gmra.mxu2 %vm236_vm1, %v666_v45  ;;  %v992_v55 = vld [vmem:[%s2306_s8 + $0x14] sm:$0xff] }
  0x89   : > { %1912 = vmatmul.msk.f32.gmra.mxu0 %vm236_vm1, %v834_v56  ;;  %1894 = vmatmul.msk.f32.gmra.mxu3 %vm236_vm1, %v670_v57  ;;  %v1158_v56 = vld [vmem:[%s2306_s8 + $0x24] sm:$0xff] }
  0x90   : > { %1853 = vmatmul.msk.f32.gmra.mxu1 %vm236_vm1, %v206_v58  ;;  %1873 = vmatmul.msk.f32.gmra.mxu2 %vm236_vm1, %v667_v48  ;;  %v843_v48 = vld [vmem:[%s2306_s8 + $0x9b] sm:$0xff] }
  0x91   : > { %1913 = vmatmul.msk.f32.gmra.mxu0 %vm236_vm1, %v835_v59  ;;  %1895 = vmatmul.msk.f32.gmra.mxu3 %vm236_vm1, %v671_v60 }
  0x98   : > { %1854 = vmatmul.msk.f32.gmra.mxu1 %vm236_vm1, %v207_v61  ;;  %1874 = vmatmul.msk.f32.gmra.mxu2 %vm236_vm1, %v668_v51  ;;  %v1326_v61 = vld [vmem:[%s2306_s8 + $0x35] sm:$0xff] }
  0x99   : > { %1914 = vmatmul.msk.f32.gmra.mxu0 %vm236_vm1, %v836_v62  ;;  %1896 = vmatmul.msk.f32.gmra.mxu3 %vm236_vm1, %v672_v63 }
  0x9d   : > { %v2443_v0 = vpop.f32.mrf.mxu1 }
  0x9e   : > { %v312_v2 = vpop.f32.mrf.mxu0 }
  0xa0   : > { %1855 = vmatmul.msk.f32.gmra.mxu1 %vm236_vm1, %v208_v1  ;;  %1875 = vmatmul.msk.f32.gmra.mxu2 %vm236_vm1, %v669_v54 }
  0xa1   : > { %1915 = vmatmul.msk.f32.gmra.mxu0 %vm236_vm1, %v837_v3  ;;  %1897 = vmatmul.msk.f32.gmra.mxu3 %vm236_vm1, %v673_v4 }
  0xa3   : > { %v2452_v5 = vpop.f32.mrf.mxu2 }
  0xa4   : > { %v2457_v8 = vpop.f32.mrf.mxu3 }
  0xa5   : > { %v2454_v6 = vpop.f32.mrf.mxu1 }
  0xa6   : > { %v2459_v9 = vpop.f32.mrf.mxu0 }
  0xa8   : > { %1856 = vmatmul.msk.f32.gmra.mxu1 %vm236_vm1, %v209_v7  ;;  %1876 = vmatmul.msk.f32.gmra.mxu2 %vm236_vm1, %v670_v57  ;;  %v1159_v7 = vld [vmem:[%s2306_s8 + $0x2c] sm:$0xff] }
  0xa9   : > { %1916 = vmatmul.msk.f32.gmra.mxu0 %vm236_vm1, %v838_v10  ;;  %1898 = vmatmul.msk.f32.gmra.mxu3 %vm236_vm1, %v674_v11 }
  0xab   : > { %v2467_v12 = vpop.f32.mrf.mxu2 }
  0xac   : > { %v2472_v15 = vpop.f32.mrf.mxu3 }
  0xad   : > { %v2469_v13 = vpop.f32.mrf.mxu1 }
  0xae   : > { %v2474_v16 = vpop.f32.mrf.mxu0 }
  0xb0   : > { %1857 = vmatmul.msk.f32.gmra.mxu1 %vm236_vm1, %v210_v14  ;;  %1877 = vmatmul.msk.f32.gmra.mxu2 %vm236_vm1, %v671_v60  ;;  %v1490_v60 = vld [vmem:[%s2306_s8 + $0x26] sm:$0xff]  ;;  %v1491_v14 = vld [vmem:[%s2306_s8 + $0x2e] sm:$0xff] }
  0xb1   : > { %1917 = vmatmul.msk.f32.gmra.mxu0 %vm236_vm1, %v839_v17  ;;  %1899 = vmatmul.msk.f32.gmra.mxu3 %vm236_vm1, %v675_v18  ;;  %v1327_v17 = vld [vmem:[%s2306_s8 + $0x3d] sm:$0xff] }
  0xb3   : > { %v2482_v19 = vpop.f32.mrf.mxu2 }
  0xb4   : > { %v2487_v22 = vpop.f32.mrf.mxu3 }
  0xb5   : > { %v2484_v20 = vpop.f32.mrf.mxu1 }
  0xb6   : > { %v2489_v23 = vpop.f32.mrf.mxu0 }
  0xb8   : > { %1858 = vmatmul.msk.f32.gmra.mxu1 %vm236_vm1, %v211_v21  ;;  %1878 = vmatmul.msk.f32.gmra.mxu2 %vm236_vm1, %v672_v63 }
  0xb9   : > { %1918 = vmatmul.msk.f32.gmra.mxu0 %vm236_vm1, %v840_v24  ;;  %1900 = vmatmul.msk.f32.gmra.mxu3 %vm236_vm1, %v676_v25 }
  0xbb   : > { %v2497_v26 = vpop.f32.mrf.mxu2 }
  0xbc   : > { %v754_v29 = vpop.f32.mrf.mxu3 }
  0xbd   : > { %v2499_v27 = vpop.f32.mrf.mxu1 }
  0xbe   : > { %v2502_v30 = vpop.f32.mrf.mxu0 }
  0xc0   : > { %1859 = vmatmul.msk.f32.gmra.mxu1 %vm236_vm1, %v212_v28  ;;  %1879 = vmatmul.msk.f32.gmra.mxu2 %vm236_vm1, %v673_v4  ;;  %v993_v4 = vld [vmem:[%s2306_s8 + $0x1c] sm:$0xff]  ;;  %v1160_v28 = vld [vmem:[%s2306_s8 + $0x34] sm:$0xff] }
  0xc1   : > { %1919 = vmatmul.msk.f32.gmra.mxu0 %vm236_vm1, %v841_v31  ;;  %1901 = vmatmul.msk.f32.gmra.mxu3 %vm236_vm1, %v677_v32 }
  0xc3   : > { %v2510_v33 = vpop.f32.mrf.mxu2 }
  0xc4   : > { %v757_v36 = vpop.f32.mrf.mxu3 }
  0xc5   : > { %v440_v34 = vpop.f32.mrf.mxu1 }
  0xc6   : > { %v920_v37 = vpop.f32.mrf.mxu0  ;;  %v441_v40 = vadd.f32 %v440_v34, %v312_v2  ;;  %v1492_v34 = vld [vmem:[%s2306_s8 + $0x36] sm:$0xff] }
  0xc8   : > { %1860 = vmatmul.msk.f32.gmra.mxu1 %vm236_vm1, %v213_v35  ;;  %1880 = vmatmul.msk.f32.gmra.mxu2 %vm236_vm1, %v674_v11  ;;  %v1328_v35 = vld [vmem:[%s2306_s8 + $0x45] sm:$0xff] }
  0xc9   : > { %1920 = vmatmul.msk.f32.gmra.mxu0 %vm236_vm1, %v842_v38  ;;  %1964 = vmatmul.msk.f32.vlgmr.msra.gmra.mxu3 %vm236_vm1, %v1324_v39 }
  0xcb   : > { %v588_v41 = vpop.f32.mrf.mxu2 }
  0xcc   : > { %v642_v42 = vadd.f32 %v588_v41, %v441_v40  ;;  %v760_v45 = vpop.f32.mrf.mxu3  ;;  %v1161_v40 = vld [vmem:[%s2306_s8 + $0x3c] sm:$0xff] }
  0xcd   : > { %v443_v43 = vpop.f32.mrf.mxu1 }
  0xce   : > { %v808_v46 = vadd.f32 %v754_v29, %v642_v42  ;;  %v923_v47 = vpop.f32.mrf.mxu0  ;;  %v444_v51 = vadd.f32 %v443_v43, %v2459_v9 }
  0xd0   : > { %v2522_v50 = vadd.f32 %v920_v37, %v808_v46  ;;  %1861 = vmatmul.msk.f32.gmra.mxu1 %vm236_vm1, %v214_v44  ;;  %1881 = vmatmul.msk.f32.gmra.mxu2 %vm236_vm1, %v675_v18  ;;  %v1493_v44 = vld [vmem:[%s2306_s8 + $0x3e] sm:$0xff] }
  0xd1   : > { %1921 = vmatmul.msk.f32.gmra.mxu0 %vm236_vm1, %v843_v48  ;;  %1965 = vmatmul.msk.f32.gmra.mxu3 %vm236_vm1, %v1325_v49 }
  0xd3   : > { %v591_v52 = vpop.f32.mrf.mxu2 }
  0xd4   : > { %v643_v53 = vadd.f32 %v591_v52, %v444_v51  ;;  %v763_v57 = vpop.f32.mrf.mxu3  ;;  %v1162_v51 = vld [vmem:[%s2306_s8 + $0x44] sm:$0xff] }
  0xd5   : > { %v446_v54 = vpop.f32.mrf.mxu1 }
  0xd6   : > { %v809_v58 = vadd.f32 %v757_v36, %v643_v53  ;;  %v926_v59 = vpop.f32.mrf.mxu0  ;;  %v447_v63 = vadd.f32 %v446_v54, %v2474_v16 }
  0xd8   : > { %v2533_v62 = vadd.f32 %v923_v47, %v809_v58  ;;  %1924 = vmatmul.msk.f32.vlgmr.msra.gmra.mxu1 %vm236_vm1, %v992_v55  ;;  %1944 = vmatmul.msk.f32.vlgmr.msra.gmra.mxu2 %vm236_vm1, %v1158_v56  ;;  %v1494_v55 = vld [vmem:[%s2306_s8 + $0x46] sm:$0xff] }
  0xd9   : > { %1984 = vmatmul.msk.f32.vlgmr.msra.gmra.mxu0 %vm236_vm1, %v1490_v60  ;;  %1966 = vmatmul.msk.f32.gmra.mxu3 %vm236_vm1, %v1326_v61  ;;  %v1163_v61 = vld [vmem:[%s2306_s8 + $0x4c] sm:$0xff] }
  0xdb   : > { %v594_v1 = vpop.f32.mrf.mxu2 }
  0xdc   : > { %v644_v2 = vadd.f32 %v594_v1, %v447_v63  ;;  %v766_v9 = vpop.f32.mrf.mxu3 }
  0xdd   : > { %v449_v3 = vpop.f32.mrf.mxu1 }
  0xde   : > { %v810_v10 = vadd.f32 %v760_v45, %v644_v2  ;;  %v929_v11 = vpop.f32.mrf.mxu0  ;;  %v450_v16 = vadd.f32 %v449_v3, %v2489_v23  ;;  %v1329_v45 = vld [vmem:[%s2306_s8 + $0x4d] sm:$0xff] }
  0xdf   : > { %v1495_v3 = vld [vmem:[%s2306_s8 + $0x4e] sm:$0xff] }
  0xe0   : > { %v2544_v18 = vadd.f32 %v926_v59, %v810_v10  ;;  %1925 = vmatmul.msk.f32.gmra.mxu1 %vm236_vm1, %v993_v4  ;;  %1945 = vmatmul.msk.f32.gmra.mxu2 %vm236_vm1, %v1159_v7  ;;  %v1331_v4 = vld [vmem:[%s2306_s8 + $0x5d] sm:$0xff] }
  0xe1   : > { %1985 = vmatmul.msk.f32.gmra.mxu0 %vm236_vm1, %v1491_v14  ;;  %1967 = vmatmul.msk.f32.gmra.mxu3 %vm236_vm1, %v1327_v17  ;;  %v1164_v14 = vld [vmem:[%s2306_s8 + $0x54] sm:$0xff] }
  0xe3   : > { %v597_v21 = vpop.f32.mrf.mxu2 }
  0xe4   : > { %v645_v24 = vadd.f32 %v597_v21, %v450_v16  ;;  %v769_v29 = vpop.f32.mrf.mxu3 }
  0xe5   : > { %v452_v25 = vpop.f32.mrf.mxu1 }
  0xe6   : > { %v811_v31 = vadd.f32 %v763_v57, %v645_v24  ;;  %v932_v32 = vpop.f32.mrf.mxu0  ;;  %v453_v23 = vadd.f32 %v452_v25, %v2502_v30  ;;  %v1496_v24 = vld [vmem:[%s2306_s8 + $0x56] sm:$0xff]  ;;  %v1332_v25 = vld [vmem:[%s2306_s8 + $0x65] sm:$0xff] }
  0xe8   : > { %v2554_v36 = vadd.f32 %v929_v11, %v811_v31  ;;  %1926 = vmatmul.msk.f32.gmra.mxu1 %vm236_vm1, %v1158_v56  ;;  %1946 = vmatmul.msk.f32.gmra.mxu2 %vm236_vm1, %v1160_v28  ;;  %v1330_v56 = vld [vmem:[%s2306_s8 + $0x55] sm:$0xff] }
  0xe9   : > { %1986 = vmatmul.msk.f32.gmra.mxu0 %vm236_vm1, %v1492_v34  ;;  %1968 = vmatmul.msk.f32.gmra.mxu3 %vm236_vm1, %v1328_v35  ;;  %v1165_v34 = vld [vmem:[%s2306_s8 + $0x5c] sm:$0xff] }
  0xeb   : > { %v600_v37 = vpop.f32.mrf.mxu2 }
  0xec   : > { %v646_v38 = vadd.f32 %v600_v37, %v453_v23  ;;  %v772_v41 = vpop.f32.mrf.mxu3 }
  0xed   : > { %v455_v39 = vpop.f32.mrf.mxu1 }
  0xee   : > { %v812_v42 = vadd.f32 %v766_v9, %v646_v38  ;;  %v935_v43 = vpop.f32.mrf.mxu0  ;;  %v456_v30 = vadd.f32 %v455_v39, %v2443_v0  ;;  %v1497_v38 = vld [vmem:[%s2306_s8 + $0x5e] sm:$0xff]  ;;  %v1333_v39 = vld [vmem:[%s2306_s8 + $0x6d] sm:$0xff] }
  0xf0   : > { %v2564_v46 = vadd.f32 %v932_v32, %v812_v42  ;;  %1927 = vmatmul.msk.f32.gmra.mxu1 %vm236_vm1, %v1159_v7  ;;  %1947 = vmatmul.msk.f32.gmra.mxu2 %vm236_vm1, %v1161_v40 }
  0xf1   : > { %1987 = vmatmul.msk.f32.gmra.mxu0 %vm236_vm1, %v1493_v44  ;;  %1969 = vmatmul.msk.f32.gmra.mxu3 %vm236_vm1, %v1329_v45  ;;  %v1166_v44 = vld [vmem:[%s2306_s8 + $0x64] sm:$0xff] }
  0xf3   : > { %v603_v47 = vpop.f32.mrf.mxu2 }
  0xf4   : > { %v647_v48 = vadd.f32 %v603_v47, %v456_v30  ;;  %v775_v52 = vpop.f32.mrf.mxu3 }
  0xf5   : > { %v458_v49 = vpop.f32.mrf.mxu1 }
  0xf6   : > { %v813_v53 = vadd.f32 %v769_v29, %v647_v48  ;;  %v938_v54 = vpop.f32.mrf.mxu0  ;;  %v459_v0 = vadd.f32 %v458_v49, %v2454_v6  ;;  %v1498_v48 = vld [vmem:[%s2306_s8 + $0x66] sm:$0xff]  ;;  %v1334_v49 = vld [vmem:[%s2306_s8 + $0x75] sm:$0xff] }
  0xf8   : > { %v2574_v57 = vadd.f32 %v935_v43, %v813_v53  ;;  %1928 = vmatmul.msk.f32.gmra.mxu1 %vm236_vm1, %v1160_v28  ;;  %1948 = vmatmul.msk.f32.gmra.mxu2 %vm236_vm1, %v1162_v51 }
  0xf9   : > { %1988 = vmatmul.msk.f32.gmra.mxu0 %vm236_vm1, %v1494_v55  ;;  %1970 = vmatmul.msk.f32.gmra.mxu3 %vm236_vm1, %v1330_v56  ;;  %v1167_v55 = vld [vmem:[%s2306_s8 + $0x6c] sm:$0xff] }
  0xfb   : > { %v606_v58 = vpop.f32.mrf.mxu2 }
  0xfc   : > { %v648_v59 = vadd.f32 %v606_v58, %v459_v0  ;;  %v778_v63 = vpop.f32.mrf.mxu3 }
  0xfd   : > { %v461_v60 = vpop.f32.mrf.mxu1 }
  0xfe   : > { %v814_v1 = vadd.f32 %v772_v41, %v648_v59  ;;  %v941_v2 = vpop.f32.mrf.mxu0  ;;  %v462_v6 = vadd.f32 %v461_v60, %v2469_v13  ;;  %v1499_v59 = vld [vmem:[%s2306_s8 + $0x6e] sm:$0xff]  ;;  %v1335_v60 = vld [vmem:[%s2306_s8 + $0x7d] sm:$0xff] }
 0x100   : > { %v2584_v7 = vadd.f32 %v938_v54, %v814_v1  ;;  %1929 = vmatmul.msk.f32.gmra.mxu1 %vm236_vm1, %v1161_v40  ;;  %1949 = vmatmul.msk.f32.gmra.mxu2 %vm236_vm1, %v1163_v61 }
 0x101   : > { %1989 = vmatmul.msk.f32.gmra.mxu0 %vm236_vm1, %v1495_v3  ;;  %1971 = vmatmul.msk.f32.gmra.mxu3 %vm236_vm1, %v1331_v4  ;;  %v1168_v3 = vld [vmem:[%s2306_s8 + $0x74] sm:$0xff] }
 0x103   : > { %v609_v9 = vpop.f32.mrf.mxu2 }
 0x104   : > { %v649_v10 = vadd.f32 %v609_v9, %v462_v6  ;;  %v781_v17 = vpop.f32.mrf.mxu3 }
 0x105   : > { %v464_v11 = vpop.f32.mrf.mxu1 }
 0x106   : > { %v815_v16 = vadd.f32 %v775_v52, %v649_v10  ;;  %v944_v21 = vpop.f32.mrf.mxu0  ;;  %v465_v13 = vadd.f32 %v464_v11, %v2484_v20  ;;  %v1500_v10 = vld [vmem:[%s2306_s8 + $0x76] sm:$0xff]  ;;  %v1336_v11 = vld [vmem:[%s2306_s8 + $0x85] sm:$0xff] }
 0x108   : > { %v2594_v28 = vadd.f32 %v941_v2, %v815_v16  ;;  %1930 = vmatmul.msk.f32.gmra.mxu1 %vm236_vm1, %v1162_v51  ;;  %1950 = vmatmul.msk.f32.gmra.mxu2 %vm236_vm1, %v1164_v14 }
 0x109   : > { %1990 = vmatmul.msk.f32.gmra.mxu0 %vm236_vm1, %v1496_v24  ;;  %1972 = vmatmul.msk.f32.gmra.mxu3 %vm236_vm1, %v1332_v25  ;;  %v1169_v24 = vld [vmem:[%s2306_s8 + $0x7c] sm:$0xff] }
 0x10b   : > { %v612_v29 = vpop.f32.mrf.mxu2 }
 0x10c   : > { %v650_v31 = vadd.f32 %v612_v29, %v465_v13  ;;  %v784_v35 = vpop.f32.mrf.mxu3 }
 0x10d   : > { %v467_v32 = vpop.f32.mrf.mxu1 }
 0x10e   : > { %v816_v23 = vadd.f32 %v778_v63, %v650_v31  ;;  %v947_v37 = vpop.f32.mrf.mxu0  ;;  %v468_v20 = vadd.f32 %v467_v32, %v2499_v27  ;;  %v1501_v31 = vld [vmem:[%s2306_s8 + $0x7e] sm:$0xff]  ;;  %v1337_v32 = vld [vmem:[%s2306_s8 + $0x8d] sm:$0xff] }
 0x110   : > { %v2604_v40 = vadd.f32 %v944_v21, %v816_v23  ;;  %1931 = vmatmul.msk.f32.gmra.mxu1 %vm236_vm1, %v1163_v61  ;;  %1951 = vmatmul.msk.f32.gmra.mxu2 %vm236_vm1, %v1165_v34 }
 0x111   : > { %1991 = vmatmul.msk.f32.gmra.mxu0 %vm236_vm1, %v1497_v38  ;;  %1973 = vmatmul.msk.f32.gmra.mxu3 %vm236_vm1, %v1333_v39  ;;  %v1170_v38 = vld [vmem:[%s2306_s8 + $0x84] sm:$0xff] }
 0x113   : > { %v615_v41 = vpop.f32.mrf.mxu2 }
 0x114   : > { %v651_v42 = vadd.f32 %v615_v41, %v468_v20  ;;  %v787_v45 = vpop.f32.mrf.mxu3 }
 0x115   : > { %v470_v43 = vpop.f32.mrf.mxu1 }
 0x116   : > { %v817_v30 = vadd.f32 %v781_v17, %v651_v42  ;;  %v950_v47 = vpop.f32.mrf.mxu0  ;;  %v471_v27 = vadd.f32 %v470_v43, %v2452_v5  ;;  %v1502_v42 = vld [vmem:[%s2306_s8 + $0x86] sm:$0xff]  ;;  %v1338_v43 = vld [vmem:[%s2306_s8 + $0x95] sm:$0xff] }
 0x118   : > { %v2614_v51 = vadd.f32 %v947_v37, %v817_v30  ;;  %1932 = vmatmul.msk.f32.gmra.mxu1 %vm236_vm1, %v1164_v14  ;;  %1952 = vmatmul.msk.f32.gmra.mxu2 %vm236_vm1, %v1166_v44 }
 0x119   : > { %1992 = vmatmul.msk.f32.gmra.mxu0 %vm236_vm1, %v1498_v48  ;;  %1974 = vmatmul.msk.f32.gmra.mxu3 %vm236_vm1, %v1334_v49  ;;  %v1171_v48 = vld [vmem:[%s2306_s8 + $0x8c] sm:$0xff] }
 0x11b   : > { %v618_v52 = vpop.f32.mrf.mxu2 }
 0x11c   : > { %v652_v53 = vadd.f32 %v618_v52, %v471_v27  ;;  %v790_v56 = vpop.f32.mrf.mxu3 }
 0x11d   : > { %v473_v54 = vpop.f32.mrf.mxu1 }
 0x11e   : > { %v818_v0 = vadd.f32 %v784_v35, %v652_v53  ;;  %v953_v58 = vpop.f32.mrf.mxu0  ;;  %v474_v5 = vadd.f32 %v473_v54, %v2467_v12  ;;  %v1503_v53 = vld [vmem:[%s2306_s8 + $0x8e] sm:$0xff]  ;;  %v1339_v54 = vld [vmem:[%s2306_s8 + $0x9d] sm:$0xff] }
 0x120   : > { %v2624_v61 = vadd.f32 %v950_v47, %v818_v0  ;;  %1933 = vmatmul.msk.f32.gmra.mxu1 %vm236_vm1, %v1165_v34  ;;  %1953 = vmatmul.msk.f32.gmra.mxu2 %vm236_vm1, %v1167_v55 }
 0x121   : > { %1993 = vmatmul.msk.f32.gmra.mxu0 %vm236_vm1, %v1499_v59  ;;  %1975 = vmatmul.msk.f32.gmra.mxu3 %vm236_vm1, %v1335_v60  ;;  %v1172_v59 = vld [vmem:[%s2306_s8 + $0x94] sm:$0xff] }
 0x123   : > { %v621_v63 = vpop.f32.mrf.mxu2 }
 0x124   : > { %v653_v1 = vadd.f32 %v621_v63, %v474_v5  ;;  %v793_v4 = vpop.f32.mrf.mxu3 }
 0x125   : > { %v476_v2 = vpop.f32.mrf.mxu1 }
 0x126   : > { %v819_v6 = vadd.f32 %v787_v45, %v653_v1  ;;  %v956_v9 = vpop.f32.mrf.mxu0  ;;  %v477_v12 = vadd.f32 %v476_v2, %v2482_v19  ;;  %v1504_v1 = vld [vmem:[%s2306_s8 + $0x96] sm:$0xff]  ;;  %v1340_v2 = vld [vmem:[%s2306_s8 + $0xa5] sm:$0xff] }
 0x128   : > { %v2634_v14 = vadd.f32 %v953_v58, %v819_v6  ;;  %1934 = vmatmul.msk.f32.gmra.mxu1 %vm236_vm1, %v1166_v44  ;;  %1954 = vmatmul.msk.f32.gmra.mxu2 %vm236_vm1, %v1168_v3 }
 0x129   : > { %1994 = vmatmul.msk.f32.gmra.mxu0 %vm236_vm1, %v1500_v10  ;;  %1976 = vmatmul.msk.f32.gmra.mxu3 %vm236_vm1, %v1336_v11  ;;  %v1173_v10 = vld [vmem:[%s2306_s8 + $0x9c] sm:$0xff] }
 0x12b   : > { %v624_v17 = vpop.f32.mrf.mxu2 }
 0x12c   : > { %v654_v16 = vadd.f32 %v624_v17, %v477_v12  ;;  %v796_v25 = vpop.f32.mrf.mxu3 }
 0x12d   : > { %v479_v21 = vpop.f32.mrf.mxu1 }
 0x12e   : > { %v820_v13 = vadd.f32 %v790_v56, %v654_v16  ;;  %v959_v29 = vpop.f32.mrf.mxu0  ;;  %v480_v19 = vadd.f32 %v479_v21, %v2497_v26  ;;  %v1505_v16 = vld [vmem:[%s2306_s8 + $0x9e] sm:$0xff]  ;;  %v1341_v21 = vld [vmem:[%s2306_s8 + $0xad] sm:$0xff] }
 0x130   : > { %v2644_v34 = vadd.f32 %v956_v9, %v820_v13  ;;  %1935 = vmatmul.msk.f32.gmra.mxu1 %vm236_vm1, %v1167_v55  ;;  %1955 = vmatmul.msk.f32.gmra.mxu2 %vm236_vm1, %v1169_v24 }
 0x131   : > { %1995 = vmatmul.msk.f32.gmra.mxu0 %vm236_vm1, %v1501_v31  ;;  %1977 = vmatmul.msk.f32.gmra.mxu3 %vm236_vm1, %v1337_v32  ;;  %v1174_v31 = vld [vmem:[%s2306_s8 + $0xa4] sm:$0xff] }
 0x133   : > { %v627_v35 = vpop.f32.mrf.mxu2 }
 0x134   : > { %v655_v23 = vadd.f32 %v627_v35, %v480_v19  ;;  %v799_v39 = vpop.f32.mrf.mxu3 }
 0x135   : > { %v482_v37 = vpop.f32.mrf.mxu1 }
 0x136   : > { %v821_v20 = vadd.f32 %v793_v4, %v655_v23  ;;  %v962_v41 = vpop.f32.mrf.mxu0  ;;  %v483_v26 = vadd.f32 %v482_v37, %v2510_v33  ;;  %v1506_v23 = vld [vmem:[%s2306_s8 + $0xa6] sm:$0xff] }
 0x138   : > { %v2654_v44 = vadd.f32 %v959_v29, %v821_v20  ;;  %1936 = vmatmul.msk.f32.gmra.mxu1 %vm236_vm1, %v1168_v3  ;;  %1956 = vmatmul.msk.f32.gmra.mxu2 %vm236_vm1, %v1170_v38 }
 0x139   : > { %1996 = vmatmul.msk.f32.gmra.mxu0 %vm236_vm1, %v1502_v42  ;;  %1978 = vmatmul.msk.f32.gmra.mxu3 %vm236_vm1, %v1338_v43 }
 0x13b   : > { %v630_v45 = vpop.f32.mrf.mxu2 }
 0x13c   : > { %v656_v30 = vadd.f32 %v630_v45, %v483_v26  ;;  %v802_v49 = vpop.f32.mrf.mxu3  ;;  %v2704_v26 = vld [vmem:[%s2815_s2] ss:$0 sm:$0xff] }
 0x13d   : > { %v485_v47 = vpop.f32.mrf.mxu1 }
 0x13e   : > { %v822_v27 = vadd.f32 %v796_v25, %v656_v30  ;;  %v965_v52 = vpop.f32.mrf.mxu0  ;;  %v486_v33 = vadd.f32 %v485_v47, %v2457_v8  ;;  %v1507_v30 = vld [vmem:[%s2306_s8 + $0xae] sm:$0xff] }
 0x140   : > { %v2664_v55 = vadd.f32 %v962_v41, %v822_v27  ;;  %1937 = vmatmul.msk.f32.gmra.mxu1 %vm236_vm1, %v1169_v24  ;;  %1957 = vmatmul.msk.f32.gmra.mxu2 %vm236_vm1, %v1171_v48  ;;  %v1175_v41 = vld [vmem:[%s2306_s8 + $0xac] sm:$0xff]  ;;  %s2011_s8 = smul.u32 18, %s2165_s15 }
 0x141   : > { %1997 = vmatmul.msk.f32.gmra.mxu0 %vm236_vm1, %v1503_v53  ;;  %1979 = vmatmul.msk.f32.gmra.mxu3 %vm236_vm1, %v1339_v54 }
 0x142   : > { %s1726_s10 = sadd.s32 %s2012_s9, %s2011_s8  ;;  %s2107_s8 = scalar_lea.hbm %s2816_s3, 576 }
 0x143   : > { %v633_v56 = vpop.f32.mrf.mxu2  ;;  %s2002_s11 = sshll.u32 %s1726_s10, 3 }
 0x144   : > { %v657_v0 = vadd.f32 %v633_v56, %v486_v33  ;;  %v805_v60 = vpop.f32.mrf.mxu3  ;;  %s1728_s20 = scalar_lea.hbm %s2816_s3, %s2002_s11 }
 0x145   : > { %v488_v58 = vpop.f32.mrf.mxu1  ;;  %s1731_s24 = sshll.u32 %s1728_s20, 4  ;;  %s1732_s24 = int_to_ptr.hbm [resolvable:$true] %s1731_s24 }
 0x146   : > { %v823_v5 = vadd.f32 %v799_v39, %v657_v0  ;;  %v968_v63 = vpop.f32.mrf.mxu0  ;;  %v489_v8 = vadd.f32 %v488_v58, %v2472_v15  ;;  %s2101_s28 = sshra.s32 %s1732_s24, 4  ;;  %s2102_s28 = int_to_ptr.hbm [resolvable:$true] %s2101_s28 }
 0x147   : > { %s2103_s4 = scalar_lea.hbm %s2102_s28, 144  ;;  %p2108_p4 = scmp.lt.s32.totalorder %s2102_s28, %s2816_s3 }
 0x148   : > { %v2674_v3 = vadd.f32 %v965_v52, %v823_v5  ;;  %1938 = vmatmul.msk.f32.gmra.mxu1 %vm236_vm1, %v1170_v38  ;;  %1958 = vmatmul.msk.f32.gmra.mxu2 %vm236_vm1, %v1172_v59  ;;  %p2104_p0 = scmp.ne.s32.totalorder %s2102_s28, %s2103_s4  ;;  %p2109_p5 = scmp.lt.s32.totalorder %s2107_s8, %s2103_s4 }
 0x149   : > { %1998 = vmatmul.msk.f32.gmra.mxu0 %vm236_vm1, %v1504_v1  ;;  %1980 = vmatmul.msk.f32.gmra.mxu3 %vm236_vm1, %v1340_v2 }
 0x14a   : > { %p2105_p1 = pnand %p2104_p0, %p2256_p3  ;;  %p2110_p6 = por %p2109_p5, %p2108_p4 }
 0x14b   : > { %v636_v4 = vpop.f32.mrf.mxu2 }
 0x14c   : > { %v658_v6 = vadd.f32 %v636_v4, %v489_v8  ;;  %v1418_v11 = vpop.f32.mrf.mxu3  ;;  %p2106_p2 = pneg %p2105_p1 }
 0x14d   : > { %v491_v9 = vpop.f32.mrf.mxu1 }
 0x14e   : > { %v824_v12 = vadd.f32 %v802_v49, %v658_v6  ;;  %v971_v17 = vpop.f32.mrf.mxu0  ;;  %v492_v15 = vadd.f32 %v491_v9, %v2487_v22  ;;  %p2111_p7 = pnand %p2110_p6, %p2106_p2 }
 0x150   : > { %v2684_v24 = vadd.f32 %v968_v63, %v824_v12  ;;  %1939 = vmatmul.msk.f32.gmra.mxu1 %vm236_vm1, %v1171_v48  ;;  %1959 = vmatmul.msk.f32.gmra.mxu2 %vm236_vm1, %v1173_v10 }
 0x151   : > { %1999 = vmatmul.msk.f32.gmra.mxu0 %vm236_vm1, %v1505_v16  ;;  %1981 = vmatmul.msk.f32.gmra.mxu3 %vm236_vm1, %v1341_v21 }
 0x153   : > { %v639_v25 = vpop.f32.mrf.mxu2 }
 0x154   : > { %v659_v13 = vadd.f32 %v639_v25, %v492_v15  ;;  %v1421_v32 = vpop.f32.mrf.mxu3 }
 0x155   : > { %v1086_v29 = vpop.f32.mrf.mxu1 }
 0x156   : > { %v825_v19 = vadd.f32 %v805_v60, %v659_v13  ;;  %v1584_v35 = vpop.f32.mrf.mxu0  ;;  %v1140_v22 = vadd.f32 %v1086_v29, %v2522_v50 }
 0x158   : > { %v2693_v37 = vadd.f32 %v971_v17, %v825_v19  ;;  %1940 = vmatmul.msk.f32.gmra.mxu1 %vm236_vm1, %v1172_v59  ;;  %1960 = vmatmul.msk.f32.gmra.mxu2 %vm236_vm1, %v1174_v31 }
 0x159   : > { %2000 = vmatmul.msk.f32.gmra.mxu0 %vm236_vm1, %v1506_v23 }
 0x15b   : > { %v1252_v38 = vpop.f32.mrf.mxu2 }
 0x15c   : > { %v1306_v39 = vadd.f32 %v1252_v38, %v1140_v22  ;;  %v1424_v42 = vpop.f32.mrf.mxu3 }
 0x15d   : > { %v1089_v20 = vpop.f32.mrf.mxu1 }
 0x15e   : > { %v1472_v43 = vadd.f32 %v1418_v11, %v1306_v39  ;;  %v1587_v45 = vpop.f32.mrf.mxu0  ;;  %v1141_v50 = vadd.f32 %v1089_v20, %v2533_v62 }
 0x160   : > { %v1638_v47 = vadd.f32 %v1584_v35, %v1472_v43  ;;  %1941 = vmatmul.msk.f32.gmra.mxu1 %vm236_vm1, %v1173_v10  ;;  %1961 = vmatmul.msk.f32.gmra.mxu2 %vm236_vm1, %v1175_v41 }
 0x161   : > { %2001 = vmatmul.msk.f32.gmra.mxu0 %vm236_vm1, %v1507_v30 }
 0x162   : > { %v1660_v48 = vadd.f32 %v2704_v26, %v1638_v47 }
 0x163   : > { %v1255_v49 = vpop.f32.mrf.mxu2 }
 0x164   : > { %v1678_v27 = vmax.f32 %v1660_v48, 0.0  ;;  %v1307_v52 = vadd.f32 %v1255_v49, %v1141_v50  ;;  %v1427_v54 = vpop.f32.mrf.mxu3 }
 0x165   : > { %v1092_v53 = vpop.f32.mrf.mxu1 }
 0x166   : > { %1696 = vst [vmem:[%s2714_s7] sm:$0xff] %v1678_v27  ;;  %v1473_v33 = vadd.f32 %v1421_v32, %v1307_v52  ;;  %v1590_v56 = vpop.f32.mrf.mxu0  ;;  %v1142_v58 = vadd.f32 %v1092_v53, %v2544_v18 }
 0x168   : > { %v1639_v0 = vadd.f32 %v1587_v45, %v1473_v33 }
 0x16a   : > { %v1661_v59 = vadd.f32 %v2704_v26, %v1639_v0 }
 0x16b   : > { %v1258_v62 = vpop.f32.mrf.mxu2 }
 0x16c   : > { %v1679_v60 = vmax.f32 %v1661_v59, 0.0  ;;  %v1308_v5 = vadd.f32 %v1258_v62, %v1142_v58  ;;  %v1430_v1 = vpop.f32.mrf.mxu3 }
 0x16d   : > { %v1095_v63 = vpop.f32.mrf.mxu1 }
 0x16e   : > { %1697 = vst [vmem:[%s2714_s7 + $0x8] sm:$0xff] %v1679_v60  ;;  %v1474_v2 = vadd.f32 %v1424_v42, %v1308_v5  ;;  %v1593_v8 = vpop.f32.mrf.mxu0  ;;  %v1143_v6 = vadd.f32 %v1095_v63, %v2554_v36 }
 0x170   : > { %v1640_v4 = vadd.f32 %v1590_v56, %v1474_v2 }
 0x172   : > { %v1662_v9 = vadd.f32 %v2704_v26, %v1640_v4 }
 0x173   : > { %v1261_v10 = vpop.f32.mrf.mxu2 }
 0x174   : > { %v1680_v11 = vmax.f32 %v1662_v9, 0.0  ;;  %v1309_v18 = vadd.f32 %v1261_v10, %v1143_v6  ;;  %v1433_v17 = vpop.f32.mrf.mxu3 }
 0x175   : > { %v1098_v12 = vpop.f32.mrf.mxu1 }
 0x176   : > { %1698 = vst [vmem:[%s2714_s7 + $0x10] sm:$0xff] %v1680_v11  ;;  %v1475_v16 = vadd.f32 %v1427_v54, %v1309_v18  ;;  %v1596_v21 = vpop.f32.mrf.mxu0  ;;  %v1144_v25 = vadd.f32 %v1098_v12, %v2564_v46 }
 0x178   : > { %v1641_v15 = vadd.f32 %v1593_v8, %v1475_v16 }
 0x17a   : > { %v1663_v13 = vadd.f32 %v2704_v26, %v1641_v15 }
 0x17b   : > { %v1264_v29 = vpop.f32.mrf.mxu2 }
 0x17c   : > { %v1681_v31 = vmax.f32 %v1663_v13, 0.0  ;;  %v1310_v36 = vadd.f32 %v1264_v29, %v1144_v25  ;;  %v1436_v19 = vpop.f32.mrf.mxu3 }
 0x17d   : > { %v1101_v32 = vpop.f32.mrf.mxu1 }
 0x17e   : > { %1699 = vst [vmem:[%s2714_s7 + $0x18] sm:$0xff] %v1681_v31  ;;  %v1476_v35 = vadd.f32 %v1430_v1, %v1310_v36  ;;  %v1599_v23 = vpop.f32.mrf.mxu0  ;;  %v1145_v38 = vadd.f32 %v1101_v32, %v2574_v57 }
 0x180   : > { %v1642_v22 = vadd.f32 %v1596_v21, %v1476_v35 }
 0x182   : > { %v1664_v39 = vadd.f32 %v2704_v26, %v1642_v22 }
 0x183   : > { %v1267_v20 = vpop.f32.mrf.mxu2 }
 0x184   : > { %v1682_v41 = vmax.f32 %v1664_v39, 0.0  ;;  %v1311_v46 = vadd.f32 %v1267_v20, %v1145_v38  ;;  %v1439_v43 = vpop.f32.mrf.mxu3 }
 0x185   : > { %v1104_v42 = vpop.f32.mrf.mxu1 }
 0x186   : > { %1700 = vst [vmem:[%s2714_s7 + $0x20] sm:$0xff] %v1682_v41  ;;  %v1477_v45 = vadd.f32 %v1433_v17, %v1311_v46  ;;  %v1602_v30 = vpop.f32.mrf.mxu0  ;;  %v1146_v50 = vadd.f32 %v1104_v42, %v2584_v7 }
 0x188   : > { %v1643_v47 = vadd.f32 %v1599_v23, %v1477_v45 }
 0x18a   : > { %v1665_v48 = vadd.f32 %v2704_v26, %v1643_v47 }
 0x18b   : > { %v1270_v49 = vpop.f32.mrf.mxu2 }
 0x18c   : > { %v1683_v27 = vmax.f32 %v1665_v48, 0.0  ;;  %v1312_v57 = vadd.f32 %v1270_v49, %v1146_v50  ;;  %v1442_v53 = vpop.f32.mrf.mxu3 }
 0x18d   : > { %v1107_v52 = vpop.f32.mrf.mxu1 }
 0x18e   : > { %1701 = vst [vmem:[%s2714_s7 + $0x28] sm:$0xff] %v1683_v27  ;;  %v1478_v54 = vadd.f32 %v1436_v19, %v1312_v57  ;;  %v1605_v33 = vpop.f32.mrf.mxu0  ;;  %v1147_v0 = vadd.f32 %v1107_v52, %v2594_v28 }
 0x190   : > { %v1644_v56 = vadd.f32 %v1602_v30, %v1478_v54 }
 0x192   : > { %v1666_v58 = vadd.f32 %v2704_v26, %v1644_v56 }
 0x193   : > { %v1273_v59 = vpop.f32.mrf.mxu2 }
 0x194   : > { %v1684_v62 = vmax.f32 %v1666_v58, 0.0  ;;  %v1313_v7 = vadd.f32 %v1273_v59, %v1147_v0  ;;  %v1445_v5 = vpop.f32.mrf.mxu3 }
 0x195   : > { %v1110_v60 = vpop.f32.mrf.mxu1 }
 0x196   : > { %1702 = vst [vmem:[%s2714_s7 + $0x30] sm:$0xff] %v1684_v62  ;;  %v1479_v63 = vadd.f32 %v1439_v43, %v1313_v7  ;;  %v1608_v1 = vpop.f32.mrf.mxu0  ;;  %v1148_v8 = vadd.f32 %v1110_v60, %v2604_v40 }
 0x198   : > { %v1645_v2 = vadd.f32 %v1605_v33, %v1479_v63 }
 0x19a   : > { %v1667_v4 = vadd.f32 %v2704_v26, %v1645_v2 }
 0x19b   : > { %v1276_v6 = vpop.f32.mrf.mxu2 }
 0x19c   : > { %v1685_v9 = vmax.f32 %v1667_v4, 0.0  ;;  %v1314_v28 = vadd.f32 %v1276_v6, %v1148_v8  ;;  %v1448_v11 = vpop.f32.mrf.mxu3 }
 0x19d   : > { %v1113_v10 = vpop.f32.mrf.mxu1 }
 0x19e   : > { %1703 = vst [vmem:[%s2714_s7 + $0x38] sm:$0xff] %v1685_v9  ;;  %v1480_v18 = vadd.f32 %v1442_v53, %v1314_v28  ;;  %v1611_v12 = vpop.f32.mrf.mxu0  ;;  %v1149_v16 = vadd.f32 %v1113_v10, %v2614_v51 }
 0x1a0   : > { %v1646_v17 = vadd.f32 %v1608_v1, %v1480_v18 }
 0x1a2   : > { %v1668_v21 = vadd.f32 %v2704_v26, %v1646_v17 }
 0x1a3   : > { %v1279_v15 = vpop.f32.mrf.mxu2 }
 0x1a4   : > { %v1686_v25 = vmax.f32 %v1668_v21, 0.0  ;;  %v1315_v40 = vadd.f32 %v1279_v15, %v1149_v16  ;;  %v1451_v36 = vpop.f32.mrf.mxu3 }
 0x1a5   : > { %v1116_v13 = vpop.f32.mrf.mxu1 }
 0x1a6   : > { %1704 = vst [vmem:[%s2714_s7 + $0x40] sm:$0xff] %v1686_v25  ;;  %v1481_v29 = vadd.f32 %v1445_v5, %v1315_v40  ;;  %v1614_v31 = vpop.f32.mrf.mxu0  ;;  %v1150_v19 = vadd.f32 %v1116_v13, %v2624_v61 }
 0x1a8   : > { %v1647_v32 = vadd.f32 %v1611_v12, %v1481_v29 }
 0x1aa   : > { %v1669_v35 = vadd.f32 %v2704_v26, %v1647_v32 }
 0x1ab   : > { %v1282_v23 = vpop.f32.mrf.mxu2 }
 0x1ac   : > { %v1687_v22 = vmax.f32 %v1669_v35, 0.0  ;;  %v1316_v51 = vadd.f32 %v1282_v23, %v1150_v19  ;;  %v1454_v46 = vpop.f32.mrf.mxu3 }
 0x1ad   : > { %v1119_v38 = vpop.f32.mrf.mxu1 }
 0x1ae   : > { %1705 = vst [vmem:[%s2714_s7 + $0x48] sm:$0xff] %v1687_v22  ;;  %v1482_v39 = vadd.f32 %v1448_v11, %v1316_v51  ;;  %v1617_v20 = vpop.f32.mrf.mxu0  ;;  %v1151_v42 = vadd.f32 %v1119_v38, %v2634_v14 }
 0x1b0   : > { %v1648_v41 = vadd.f32 %v1614_v31, %v1482_v39 }
 0x1b2   : > { %v1670_v43 = vadd.f32 %v2704_v26, %v1648_v41 }
 0x1b3   : > { %v1285_v45 = vpop.f32.mrf.mxu2 }
 0x1b4   : > { %v1688_v30 = vmax.f32 %v1670_v43, 0.0  ;;  %v1317_v61 = vadd.f32 %v1285_v45, %v1151_v42  ;;  %v1457_v53 = vpop.f32.mrf.mxu3 }
 0x1b5   : > { %v1122_v47 = vpop.f32.mrf.mxu1 }
 0x1b6   : > { %1706 = vst [vmem:[%s2714_s7 + $0x50] sm:$0xff] %v1688_v30  ;;  %v1483_v50 = vadd.f32 %v1451_v36, %v1317_v61  ;;  %v1620_v48 = vpop.f32.mrf.mxu0  ;;  %v1152_v27 = vadd.f32 %v1122_v47, %v2644_v34 }
 0x1b8   : > { %v1649_v49 = vadd.f32 %v1617_v20, %v1483_v50 }
 0x1ba   : > { %v1671_v57 = vadd.f32 %v2704_v26, %v1649_v49 }
 0x1bb   : > { %v1288_v52 = vpop.f32.mrf.mxu2 }
 0x1bc   : > { %v1689_v54 = vmax.f32 %v1671_v57, 0.0  ;;  %v1318_v14 = vadd.f32 %v1288_v52, %v1152_v27  ;;  %v1460_v63 = vpop.f32.mrf.mxu3 }
 0x1bd   : > { %v1125_v33 = vpop.f32.mrf.mxu1 }
 0x1be   : > { %1707 = vst [vmem:[%s2714_s7 + $0x58] sm:$0xff] %v1689_v54  ;;  %v1484_v56 = vadd.f32 %v1454_v46, %v1318_v14  ;;  %v1623_v0 = vpop.f32.mrf.mxu0  ;;  %v1153_v59 = vadd.f32 %v1125_v33, %v2654_v44 }
 0x1c0   : > { %v1650_v58 = vadd.f32 %v1620_v48, %v1484_v56 }
 0x1c2   : > { %v1672_v62 = vadd.f32 %v2704_v26, %v1650_v58 }
 0x1c3   : > { %v1291_v7 = vpop.f32.mrf.mxu2 }
 0x1c4   : > { %v1690_v60 = vmax.f32 %v1672_v62, 0.0  ;;  %v1319_v34 = vadd.f32 %v1291_v7, %v1153_v59  ;;  %v1463_v18 = vpop.f32.mrf.mxu3 }
 0x1c5   : > { %v1128_v5 = vpop.f32.mrf.mxu1 }
 0x1c6   : > { %1708 = vst [vmem:[%s2714_s7 + $0x60] sm:$0xff] %v1690_v60  ;;  %v1485_v1 = vadd.f32 %v1457_v53, %v1319_v34  ;;  %v1626_v2 = vpop.f32.mrf.mxu0  ;;  %v1154_v4 = vadd.f32 %v1128_v5, %v2664_v55 }
 0x1c8   : > { %v1651_v8 = vadd.f32 %v1623_v0, %v1485_v1 }
 0x1ca   : > { %v1673_v6 = vadd.f32 %v2704_v26, %v1651_v8 }
 0x1cb   : > { %v1294_v9 = vpop.f32.mrf.mxu2 }
 0x1cc   : > { %v1691_v28 = vmax.f32 %v1673_v6, 0.0  ;;  %v1320_v44 = vadd.f32 %v1294_v9, %v1154_v4  ;;  %v1466_v31 = vpop.f32.mrf.mxu3 }
 0x1cd   : > { %v1131_v10 = vpop.f32.mrf.mxu1 }
 0x1ce   : > { %1709 = vst [vmem:[%s2714_s7 + $0x68] sm:$0xff] %v1691_v28  ;;  %v1486_v11 = vadd.f32 %v1460_v63, %v1320_v44  ;;  %v1629_v17 = vpop.f32.mrf.mxu0  ;;  %v1155_v16 = vadd.f32 %v1131_v10, %v2674_v3 }
 0x1d0   : > { %v1652_v12 = vadd.f32 %v1626_v2, %v1486_v11 }
 0x1d2   : > { %v1674_v21 = vadd.f32 %v2704_v26, %v1652_v12 }
 0x1d3   : > { %v1297_v15 = vpop.f32.mrf.mxu2 }
 0x1d4   : > { %v1692_v55 = vmax.f32 %v1674_v21, 0.0  ;;  %v1321_v25 = vadd.f32 %v1297_v15, %v1155_v16  ;;  %v1469_v41 = vpop.f32.mrf.mxu3 }
 0x1d5   : > { %v1134_v40 = vpop.f32.mrf.mxu1 }
 0x1d6   : > { %1710 = vst [vmem:[%s2714_s7 + $0x70] sm:$0xff] %v1692_v55  ;;  %v1487_v13 = vadd.f32 %v1463_v18, %v1321_v25  ;;  %v1156_v36 = vadd.f32 %v1134_v40, %v2684_v24  ;;  %v1632_v35 = vpop.f32.mrf.mxu0 }
 0x1d8   : > { %v1653_v29 = vadd.f32 %v1629_v17, %v1487_v13 }
 0x1da   : > { %v1675_v32 = vadd.f32 %v2704_v26, %v1653_v29 }
 0x1db   : > { %v1300_v19 = vpop.f32.mrf.mxu2 }
 0x1dc   : > { %v1693_v3 = vmax.f32 %v1675_v32, 0.0  ;;  %v1322_v23 = vadd.f32 %v1300_v19, %v1156_v36 }
 0x1dd   : > { %v1137_v51 = vpop.f32.mrf.mxu1 }
 0x1de   : > { %1711 = vst [vmem:[%s2714_s7 + $0x78] sm:$0xff] %v1693_v3  ;;  %v1488_v22 = vadd.f32 %v1466_v31, %v1322_v23  ;;  %v1157_v39 = vadd.f32 %v1137_v51, %v2693_v37  ;;  %v1635_v43 = vpop.f32.mrf.mxu0 }
 0x1e0   : > { %v1654_v38 = vadd.f32 %v1632_v35, %v1488_v22 }
 0x1e2   : > { %v1676_v20 = vadd.f32 %v2704_v26, %v1654_v38 }
 0x1e3   : > { %v1303_v24 = vpop.f32.mrf.mxu2 }
 0x1e4   : > { %v1694_v46 = vmax.f32 %v1676_v20, 0.0  ;;  %v1323_v42 = vadd.f32 %v1303_v24, %v1157_v39 }
 0x1e6   : > { %1712 = vst [vmem:[%s2714_s7 + $0x80] sm:$0xff] %v1694_v46  ;;  %v1489_v45 = vadd.f32 %v1469_v41, %v1323_v42 }
 0x1e8   : > { %v1655_v30 = vadd.f32 %v1635_v43, %v1489_v45 }
 0x1ea   : > { %v1677_v37 = vadd.f32 %v2704_v26, %v1655_v30 }
 0x1ec   : > { %v1695_v61 = vmax.f32 %v1677_v37, 0.0 }
 0x1ee   : > { %1713 = vst [vmem:[%s2714_s7 + $0x88] sm:$0xff] %v1695_v61 }
 0x1ef   : > { %2114 = shalt.err (!%p2111_p7)
}
 0x1f0   : > { %s2183_s29 = smov 128   ;;  %s2184_s7 = smov 8  }
 0x1f1   : > { %2013 = dma.vmem_to_hbm [thread:$0]  (%p2256_p3), %s1730_s21, 2304, %s1732_s24, %s1715_s27, %s2183_s29, %s2183_s29, %s2184_s7  }
 0x1f2 PF: > { %p2019_p9 = scmp.ge.s32.totalorder %s2181_s19, 2  ;;  %s1746_s11 = sand.u32 1, %s2153_s12  }
 0x1f3   : > { %s1747_s15 = scalar_lea.sflag [#allocation3], %s1746_s11 }
 0x1f4   : > { %p2016_p10 = pnand %p2019_p9, %p2265_p8 }
 0x1f6   : > { %p2017_p11 = pneg %p2016_p10 }
 0x1f8   : > { %2148 = dma.done.wait (%p2017_p11), %s1747_s15, 2304  }
 0x1f9   : > { %2150 = vsyncadd (%p2017_p11), %s1747_s15, 4294964992  ;;  %s16_s19 = sadd.s32 1, %s2181_s19   ;;  %s2819_s12 = smov %s2157_s13 }
 0x1fa   : > { %p13_p12 = scmp.ge.s32.totalorder %s16_s19, 6   ;;  %s2820_s13 = smov %s2161_s14 }
 0x1fb   : > { %s2821_s14 = smov %s2274_s30  ;;  %s2822_s15 = smov %s2173_s17 }
 0x1fc   : > { %s2823_s16 = smov %s2177_s18  ;;  %s2824_s17 = smov %s2827_s22 }
 0x1fd   : > { %s2825_s18 = smov %s2831_s23  ;;  %15 = sbr.rel (!%p13_p12) target bundleno = 5 (0x5), region = 75 }
 0x202   :  { %1753 = vsyncpa [#allocation3], 1 }
 0x203   :  { %1755 = vsyncpa [#allocation3 + $0x1], 1 }

</bundles_post_ra>
